<compile_context>
chip_gen: v7x
topology: tpu7x:2x2x1
jax: 0.10.0
libtpu: 0.0.40
codegen_flags: <defaults>
</compile_context>

<pallas_src>
import numpy as np
import jax
import jax.numpy as jnp
from jax.experimental import pallas as pl
from jax.experimental.pallas import tpu as pltpu


def _ceil_to(x: int, m: int) -> int:
    return ((x + m - 1) // m) * m


def make_kernel(n_conv: int, N: int, C: int, L: int, eps: float = 1e-5):
    f32 = jnp.float32

    def kernel(convw_ref, convb_ref,          # SMEM: flat conv weights / biases
               shifts_ref,                     # VMEM: (2*n_conv, L, L) one-hot shifts
               x_ref,                          # VMEM: (C, N, L)
               w1_ref, b1_ref, g1_ref, be1_ref,
               w2_ref, b2_ref, g2_ref, be2_ref,
               w3_ref, b3_ref,
               out_ref):
        # Per-channel activation tiles (N, L) and the running relu(conv) sum.
        xs = [x_ref[c] for c in range(C)]
        acc = [jnp.zeros((N, L), f32) for _ in range(C)]

        # Dilated residual conv stack (kernel_size=2, padding='same').
        for i in range(n_conv):
            s0 = shifts_ref[2 * i]           # (L, L): tap 0 reads x[t - left]
            s1 = shifts_ref[2 * i + 1]       # (L, L): tap 1 reads x[t + right]
            x0 = [jnp.dot(xs[c], s0, preferred_element_type=f32) for c in range(C)]
            x1 = [jnp.dot(xs[c], s1, preferred_element_type=f32) for c in range(C)]

            new_xs = []
            for o in range(C):
                y = convb_ref[i * C + o] + jnp.zeros((N, L), f32)
                for c in range(C):
                    base = ((i * C + o) * C + c) * 2
                    y = y + convw_ref[base] * x0[c] + convw_ref[base + 1] * x1[c]
                y = jnp.maximum(y, 0.0)          # relu
                acc[o] = acc[o] + y              # sum = sum + relu(conv(X))
                new_xs.append(xs[o] + y)         # X = relu(conv(X)) + X
            xs = new_xs

        # linear1 over the channel-major flatten of (sum / n_conv):
        #   h = sum_c (acc_c) @ W1_c^T, scaled by 1/n_conv, plus bias.
        h = jnp.dot(acc[0], w1_ref[0], preferred_element_type=f32)
        for c in range(1, C):
            h = h + jnp.dot(acc[c], w1_ref[c], preferred_element_type=f32)
        h = h * (1.0 / n_conv) + b1_ref[...]
        h = jnp.maximum(h, 0.0)

        # bn1 (batch statistics), folded to scale/shift with rsqrt.
        mu = jnp.mean(h, axis=0, keepdims=True)
        var = jnp.maximum(jnp.mean(h * h, axis=0, keepdims=True) - mu * mu, 0.0)
        scale = g1_ref[...] * jax.lax.rsqrt(var + eps)
        h = h * scale + (be1_ref[...] - mu * scale)

        # linear2 -> relu -> bn2
        h2 = jnp.dot(h, w2_ref[...], preferred_element_type=f32) + b2_ref[...]
        h2 = jnp.maximum(h2, 0.0)
        mu2 = jnp.mean(h2, axis=0, keepdims=True)
        var2 = jnp.maximum(jnp.mean(h2 * h2, axis=0, keepdims=True) - mu2 * mu2, 0.0)
        scale2 = g2_ref[...] * jax.lax.rsqrt(var2 + eps)
        h2 = h2 * scale2 + (be2_ref[...] - mu2 * scale2)

        # linear3 -> softmax over classes (padded logit lanes carry -1e30 bias).
        logits = jnp.dot(h2, w3_ref[...], preferred_element_type=f32) + b3_ref[...]
        m = jnp.max(logits, axis=1, keepdims=True)
        e = jnp.exp(logits - m)
        out_ref[...] = e / jnp.sum(e, axis=1, keepdims=True)   # exact normalize

    return kernel


def wavenet_classify(X, p, n_conv: int, num_class: int):
    """X: (N, C, L) float32.  Returns (N, num_class) softmax probabilities."""
    N, C, L = X.shape
    CL = C * L
    H = p['W1'].shape[0]                        # 100
    f32 = jnp.float32

    H_PAD = _ceil_to(max(H, 128), 128)          # 100 -> 128
    CL_PAD = _ceil_to(max(CL, 128), 128)        # 64  -> 128
    K_PAD = _ceil_to(max(num_class, 128), 128)  # 5   -> 128

    # Activations channel-leading so the kernel slices one (N, L) tile per channel.
    x_cnl = jnp.transpose(X, (1, 0, 2)).astype(f32)           # (C, N, L)

    # Raw per-tap conv weights/biases, flattened for SMEM scalar reads.
    convw = p['conv_w'].astype(f32).reshape(-1)               # ((i*C+o)*C+c)*2 + tap
    convb = p['conv_b'].astype(f32).reshape(-1)               # i*C + o

    # One-hot temporal shift matrices: x0 = x @ S0 gives x[t-left] (0 padded),
    # x1 = x @ S1 gives x[t+right] (0 padded).  torch 'same' split per layer.
    shifts_np = np.zeros((2 * n_conv, L, L), np.float32)
    for i in range(n_conv):
        d = 2 ** i
        left, right = d // 2, d - d // 2
        shifts_np[2 * i] = np.eye(L, k=left, dtype=np.float32)
        shifts_np[2 * i + 1] = np.eye(L, k=-right, dtype=np.float32)
    shifts = jnp.asarray(shifts_np)

    # linear1: W1 (H, CL) -> per-channel (C, L, H), padded lane-dense.
    w1t = p['W1'].T.reshape(C, L, H)
    w1t = jnp.pad(w1t, ((0, 0), (0, 0), (0, H_PAD - H))).astype(f32)
    b1 = jnp.pad(p['b1'], (0, H_PAD - H))[None, :].astype(f32)
    g1 = jnp.pad(p['g1'], (0, H_PAD - H), constant_values=1.0)[None, :].astype(f32)
    be1 = jnp.pad(p['be1'], (0, H_PAD - H))[None, :].astype(f32)

    # linear2: W2 (CL, H) -> W2.T padded to (H_PAD, CL_PAD).
    w2t = jnp.pad(p['W2'].T, ((0, H_PAD - H), (0, CL_PAD - CL))).astype(f32)
    b2 = jnp.pad(p['b2'], (0, CL_PAD - CL))[None, :].astype(f32)
    g2 = jnp.pad(p['g2'], (0, CL_PAD - CL), constant_values=1.0)[None, :].astype(f32)
    be2 = jnp.pad(p['be2'], (0, CL_PAD - CL))[None, :].astype(f32)

    # linear3: W3 (K, CL) -> W3.T padded to (CL_PAD, K_PAD); padded classes get -1e30 bias.
    w3t = jnp.pad(p['W3'].T, ((0, CL_PAD - CL), (0, K_PAD - num_class))).astype(f32)
    b3 = jnp.pad(p['b3'], (0, K_PAD - num_class),
                 constant_values=-1e30)[None, :].astype(f32)

    smem = pl.BlockSpec(memory_space=pltpu.MemorySpace.SMEM)
    vmem = pl.BlockSpec(memory_space=pltpu.MemorySpace.VMEM)

    flops = (2 * n_conv * 2 * C * N * L * L        # temporal-shift matmuls
             + 4 * n_conv * C * C * N * L          # channel mix (VPU)
             + 2 * N * C * L * H_PAD
             + 2 * N * H_PAD * CL_PAD
             + 2 * N * CL_PAD * K_PAD)
    bytes_accessed = 4 * int(x_cnl.size + convw.size + convb.size + shifts.size
                             + w1t.size + b1.size + g1.size + be1.size
                             + w2t.size + b2.size + g2.size + be2.size
                             + w3t.size + b3.size + N * K_PAD)
    cost = pl.CostEstimate(flops=int(flops),
                           transcendentals=int(N * K_PAD + 2 * (H_PAD + CL_PAD)),
                           bytes_accessed=bytes_accessed)

    kernel = make_kernel(n_conv, N, C, L)
    # TODO(synk): for large N, add a batch grid with dimension_semantics=("parallel",)
    # (needs a cross-block pass for the BatchNorm batch statistics).
    out = pl.pallas_call(
        kernel,
        out_shape=jax.ShapeDtypeStruct((N, K_PAD), f32),
        in_specs=[smem, smem] + [vmem] * 12,
        out_specs=vmem,
        compiler_params=pltpu.CompilerParams(vmem_limit_bytes=32 * 1024 * 1024),
        cost_estimate=cost,
    )(convw, convb, shifts, x_cnl,
      w1t, b1, g1, be1,
      w2t, b2, g2, be2,
      w3t, b3)
    return out[:, :num_class]


def init_params(key, n_conv, C, L, K):
    CL = C * L
    ks = jax.random.split(key, 12)
    f32 = jnp.float32
    return {
        'conv_w': jax.random.normal(ks[0], (n_conv, C, C, 2), f32) * 0.3,
        'conv_b': jax.random.normal(ks[1], (n_conv, C), f32) * 0.1,
        'W1': jax.random.normal(ks[2], (100, CL), f32) * (1.0 / jnp.sqrt(CL)),
        'b1': jax.random.normal(ks[3], (100,), f32) * 0.1,
        'g1': 1.0 + jax.random.normal(ks[4], (100,), f32) * 0.1,
        'be1': jax.random.normal(ks[5], (100,), f32) * 0.1,
        'W2': jax.random.normal(ks[6], (CL, 100), f32) * 0.1,
        'b2': jax.random.normal(ks[7], (CL,), f32) * 0.1,
        'g2': 1.0 + jax.random.normal(ks[8], (CL,), f32) * 0.1,
        'be2': jax.random.normal(ks[9], (CL,), f32) * 0.1,
        'W3': jax.random.normal(ks[10], (K, CL), f32) * (1.0 / jnp.sqrt(CL)),
        'b3': jax.random.normal(ks[11], (K,), f32) * 0.1,
    }


def reference(X, p, n_conv):
    """Pure-JAX mirror of the PyTorch forward (for validation)."""
    N, C, L = X.shape
    x = X
    s = jnp.zeros_like(X)
    for i in range(n_conv):
        d = 2 ** i
        left, right = d // 2, d - d // 2
        xp = jnp.pad(x, ((0, 0), (0, 0), (left, right)))
        w0, w1 = p['conv_w'][i, :, :, 0], p['conv_w'][i, :, :, 1]
        y = (jnp.einsum('oc,ncl->nol', w0, xp[:, :, :L])
             + jnp.einsum('oc,ncl->nol', w1, xp[:, :, d:d + L])
             + p['conv_b'][i][None, :, None])
        y = jnp.maximum(y, 0.0)
        s = s + y
        x = x + y
    s = s / n_conv
    ret = s.reshape(N, C * L)
    h = jnp.maximum(ret @ p['W1'].T + p['b1'], 0.0)
    mu, var = h.mean(0), ((h - h.mean(0)) ** 2).mean(0)
    h = p['g1'] * (h - mu) / jnp.sqrt(var + 1e-5) + p['be1']
    h2 = jnp.maximum(h @ p['W2'].T + p['b2'], 0.0)
    mu2, var2 = h2.mean(0), ((h2 - h2.mean(0)) ** 2).mean(0)
    h2 = p['g2'] * (h2 - mu2) / jnp.sqrt(var2 + 1e-5) + p['be2']
    logits = h2 @ p['W3'].T + p['b3']
    return jax.nn.softmax(logits, axis=1)


if __name__ == "__main__":
    # WaveNetForClassification(n_conv_layers=3, input_channels=4,
    #                          output_channels=4, num_class=5, num_sequence=16)
    n_conv, C, L, K, N = 3, 4, 16, 5, 2

    key = jax.random.PRNGKey(0)
    kx, kp = jax.random.split(key)
    X = jax.random.normal(kx, (N, C, L), jnp.float32)
    params = init_params(kp, n_conv, C, L, K)

    out = wavenet_classify(X, params, n_conv, K)
    out = jax.block_until_ready(out)

    ref = reference(X, params, n_conv)
    assert out.shape == (N, K)
    assert jnp.allclose(jnp.sum(out, axis=1), 1.0, atol=1e-5)
    assert jnp.allclose(out, ref, atol=1e-3, rtol=1e-2), (out, ref)

    print("KERNEL_OK")
</pallas_src>

<mosaic_0001>
module attributes {stable_mosaic.version = 11 : i64} {
  func.func @kernel(%arg0: memref<96xf32, #tpu.memory_space<smem>>, %arg1: memref<12xf32, #tpu.memory_space<smem>>, %arg2: memref<6x16x16xf32, #tpu.memory_space<vmem>>, %arg3: memref<4x2x16xf32, #tpu.memory_space<vmem>>, %arg4: memref<4x16x128xf32, #tpu.memory_space<vmem>>, %arg5: memref<1x128xf32, #tpu.memory_space<vmem>>, %arg6: memref<1x128xf32, #tpu.memory_space<vmem>>, %arg7: memref<1x128xf32, #tpu.memory_space<vmem>>, %arg8: memref<128x128xf32, #tpu.memory_space<vmem>>, %arg9: memref<1x128xf32, #tpu.memory_space<vmem>>, %arg10: memref<1x128xf32, #tpu.memory_space<vmem>>, %arg11: memref<1x128xf32, #tpu.memory_space<vmem>>, %arg12: memref<128x128xf32, #tpu.memory_space<vmem>>, %arg13: memref<1x128xf32, #tpu.memory_space<vmem>>, %arg14: memref<2x128xf32, #tpu.memory_space<vmem>>) attributes {dimension_semantics = [], scalar_prefetch = 0 : i64, scratch_operands = 0 : i64, tpu.core_type = #tpu.core_type<tc>} {
    %c0 = arith.constant 0 : index
    %c0_0 = arith.constant 0 : index
    %c0_1 = arith.constant 0 : index
    %0 = vector.load %arg3[%c0, %c0_0, %c0_1] : memref<4x2x16xf32, #tpu.memory_space<vmem>>, vector<1x2x16xf32>
    %1 = vector.shape_cast %0 : vector<1x2x16xf32> to vector<2x16xf32>
    %c1 = arith.constant 1 : index
    %c0_2 = arith.constant 0 : index
    %c0_3 = arith.constant 0 : index
    %2 = vector.load %arg3[%c1, %c0_2, %c0_3] : memref<4x2x16xf32, #tpu.memory_space<vmem>>, vector<1x2x16xf32>
    %3 = vector.shape_cast %2 : vector<1x2x16xf32> to vector<2x16xf32>
    %c2 = arith.constant 2 : index
    %c0_4 = arith.constant 0 : index
    %c0_5 = arith.constant 0 : index
    %4 = vector.load %arg3[%c2, %c0_4, %c0_5] : memref<4x2x16xf32, #tpu.memory_space<vmem>>, vector<1x2x16xf32>
    %5 = vector.shape_cast %4 : vector<1x2x16xf32> to vector<2x16xf32>
    %c3 = arith.constant 3 : index
    %c0_6 = arith.constant 0 : index
    %c0_7 = arith.constant 0 : index
    %6 = vector.load %arg3[%c3, %c0_6, %c0_7] : memref<4x2x16xf32, #tpu.memory_space<vmem>>, vector<1x2x16xf32>
    %7 = vector.shape_cast %6 : vector<1x2x16xf32> to vector<2x16xf32>
    %cst = arith.constant 0.000000e+00 : f32
    %8 = vector.broadcast %cst : f32 to vector<2x16xf32>
    %cst_8 = arith.constant 0.000000e+00 : f32
    %9 = vector.broadcast %cst_8 : f32 to vector<2x16xf32>
    %cst_9 = arith.constant 0.000000e+00 : f32
    %10 = vector.broadcast %cst_9 : f32 to vector<2x16xf32>
    %cst_10 = arith.constant 0.000000e+00 : f32
    %11 = vector.broadcast %cst_10 : f32 to vector<2x16xf32>
    %c0_11 = arith.constant 0 : index
    %c0_12 = arith.constant 0 : index
    %c0_13 = arith.constant 0 : index
    %12 = vector.load %arg2[%c0_11, %c0_12, %c0_13] : memref<6x16x16xf32, #tpu.memory_space<vmem>>, vector<1x16x16xf32>
    %13 = vector.shape_cast %12 : vector<1x16x16xf32> to vector<16x16xf32>
    %c1_14 = arith.constant 1 : index
    %c0_15 = arith.constant 0 : index
    %c0_16 = arith.constant 0 : index
    %14 = vector.load %arg2[%c1_14, %c0_15, %c0_16] : memref<6x16x16xf32, #tpu.memory_space<vmem>>, vector<1x16x16xf32>
    %15 = vector.shape_cast %14 : vector<1x16x16xf32> to vector<16x16xf32>
    %cst_17 = arith.constant dense<0.000000e+00> : vector<2x16xf32>
    %16 = tpu.matmul %1, %13, %cst_17 {dimension_numbers = #tpu.dot_dimension_numbers<[1], [0], [0], [1], [0, 0, 1, 1], [], []>} : vector<2x16xf32>, vector<16x16xf32>, vector<2x16xf32> -> vector<2x16xf32>
    %cst_18 = arith.constant dense<0.000000e+00> : vector<2x16xf32>
    %17 = tpu.matmul %3, %13, %cst_18 {dimension_numbers = #tpu.dot_dimension_numbers<[1], [0], [0], [1], [0, 0, 1, 1], [], []>} : vector<2x16xf32>, vector<16x16xf32>, vector<2x16xf32> -> vector<2x16xf32>
    %cst_19 = arith.constant dense<0.000000e+00> : vector<2x16xf32>
    %18 = tpu.matmul %5, %13, %cst_19 {dimension_numbers = #tpu.dot_dimension_numbers<[1], [0], [0], [1], [0, 0, 1, 1], [], []>} : vector<2x16xf32>, vector<16x16xf32>, vector<2x16xf32> -> vector<2x16xf32>
    %cst_20 = arith.constant dense<0.000000e+00> : vector<2x16xf32>
    %19 = tpu.matmul %7, %13, %cst_20 {dimension_numbers = #tpu.dot_dimension_numbers<[1], [0], [0], [1], [0, 0, 1, 1], [], []>} : vector<2x16xf32>, vector<16x16xf32>, vector<2x16xf32> -> vector<2x16xf32>
    %cst_21 = arith.constant dense<0.000000e+00> : vector<2x16xf32>
    %20 = tpu.matmul %1, %15, %cst_21 {dimension_numbers = #tpu.dot_dimension_numbers<[1], [0], [0], [1], [0, 0, 1, 1], [], []>} : vector<2x16xf32>, vector<16x16xf32>, vector<2x16xf32> -> vector<2x16xf32>
    %cst_22 = arith.constant dense<0.000000e+00> : vector<2x16xf32>
    %21 = tpu.matmul %3, %15, %cst_22 {dimension_numbers = #tpu.dot_dimension_numbers<[1], [0], [0], [1], [0, 0, 1, 1], [], []>} : vector<2x16xf32>, vector<16x16xf32>, vector<2x16xf32> -> vector<2x16xf32>
    %cst_23 = arith.constant dense<0.000000e+00> : vector<2x16xf32>
    %22 = tpu.matmul %5, %15, %cst_23 {dimension_numbers = #tpu.dot_dimension_numbers<[1], [0], [0], [1], [0, 0, 1, 1], [], []>} : vector<2x16xf32>, vector<16x16xf32>, vector<2x16xf32> -> vector<2x16xf32>
    %cst_24 = arith.constant dense<0.000000e+00> : vector<2x16xf32>
    %23 = tpu.matmul %7, %15, %cst_24 {dimension_numbers = #tpu.dot_dimension_numbers<[1], [0], [0], [1], [0, 0, 1, 1], [], []>} : vector<2x16xf32>, vector<16x16xf32>, vector<2x16xf32> -> vector<2x16xf32>
    %c0_25 = arith.constant 0 : index
    %24 = memref.load %arg1[%c0_25] : memref<12xf32, #tpu.memory_space<smem>>
    %cst_26 = arith.constant 0.000000e+00 : f32
    %25 = vector.broadcast %cst_26 : f32 to vector<2x16xf32>
    %26 = vector.broadcast %24 : f32 to vector<2x16xf32>
    %27 = arith.addf %26, %25 : vector<2x16xf32>
    %c0_27 = arith.constant 0 : index
    %28 = memref.load %arg0[%c0_27] : memref<96xf32, #tpu.memory_space<smem>>
    %29 = vector.broadcast %28 : f32 to vector<2x16xf32>
    %30 = arith.mulf %29, %16 : vector<2x16xf32>
    %31 = arith.addf %27, %30 : vector<2x16xf32>
    %c1_28 = arith.constant 1 : index
    %32 = memref.load %arg0[%c1_28] : memref<96xf32, #tpu.memory_space<smem>>
    %33 = vector.broadcast %32 : f32 to vector<2x16xf32>
    %34 = arith.mulf %33, %20 : vector<2x16xf32>
    %35 = arith.addf %31, %34 : vector<2x16xf32>
    %c2_29 = arith.constant 2 : index
    %36 = memref.load %arg0[%c2_29] : memref<96xf32, #tpu.memory_space<smem>>
    %37 = vector.broadcast %36 : f32 to vector<2x16xf32>
    %38 = arith.mulf %37, %17 : vector<2x16xf32>
    %39 = arith.addf %35, %38 : vector<2x16xf32>
    %c3_30 = arith.constant 3 : index
    %40 = memref.load %arg0[%c3_30] : memref<96xf32, #tpu.memory_space<smem>>
    %41 = vector.broadcast %40 : f32 to vector<2x16xf32>
    %42 = arith.mulf %41, %21 : vector<2x16xf32>
    %43 = arith.addf %39, %42 : vector<2x16xf32>
    %c4 = arith.constant 4 : index
    %44 = memref.load %arg0[%c4] : memref<96xf32, #tpu.memory_space<smem>>
    %45 = vector.broadcast %44 : f32 to vector<2x16xf32>
    %46 = arith.mulf %45, %18 : vector<2x16xf32>
    %47 = arith.addf %43, %46 : vector<2x16xf32>
    %c5 = arith.constant 5 : index
    %48 = memref.load %arg0[%c5] : memref<96xf32, #tpu.memory_space<smem>>
    %49 = vector.broadcast %48 : f32 to vector<2x16xf32>
    %50 = arith.mulf %49, %22 : vector<2x16xf32>
    %51 = arith.addf %47, %50 : vector<2x16xf32>
    %c6 = arith.constant 6 : index
    %52 = memref.load %arg0[%c6] : memref<96xf32, #tpu.memory_space<smem>>
    %53 = vector.broadcast %52 : f32 to vector<2x16xf32>
    %54 = arith.mulf %53, %19 : vector<2x16xf32>
    %55 = arith.addf %51, %54 : vector<2x16xf32>
    %c7 = arith.constant 7 : index
    %56 = memref.load %arg0[%c7] : memref<96xf32, #tpu.memory_space<smem>>
    %57 = vector.broadcast %56 : f32 to vector<2x16xf32>
    %58 = arith.mulf %57, %23 : vector<2x16xf32>
    %59 = arith.addf %55, %58 : vector<2x16xf32>
    %cst_31 = arith.constant 0.000000e+00 : f32
    %60 = vector.broadcast %cst_31 : f32 to vector<2x16xf32>
    %61 = arith.maximumf %59, %60 : vector<2x16xf32>
    %62 = arith.addf %8, %61 : vector<2x16xf32>
    %63 = arith.addf %1, %61 : vector<2x16xf32>
    %c1_32 = arith.constant 1 : index
    %64 = memref.load %arg1[%c1_32] : memref<12xf32, #tpu.memory_space<smem>>
    %cst_33 = arith.constant 0.000000e+00 : f32
    %65 = vector.broadcast %cst_33 : f32 to vector<2x16xf32>
    %66 = vector.broadcast %64 : f32 to vector<2x16xf32>
    %67 = arith.addf %66, %65 : vector<2x16xf32>
    %c8 = arith.constant 8 : index
    %68 = memref.load %arg0[%c8] : memref<96xf32, #tpu.memory_space<smem>>
    %69 = vector.broadcast %68 : f32 to vector<2x16xf32>
    %70 = arith.mulf %69, %16 : vector<2x16xf32>
    %71 = arith.addf %67, %70 : vector<2x16xf32>
    %c9 = arith.constant 9 : index
    %72 = memref.load %arg0[%c9] : memref<96xf32, #tpu.memory_space<smem>>
    %73 = vector.broadcast %72 : f32 to vector<2x16xf32>
    %74 = arith.mulf %73, %20 : vector<2x16xf32>
    %75 = arith.addf %71, %74 : vector<2x16xf32>
    %c10 = arith.constant 10 : index
    %76 = memref.load %arg0[%c10] : memref<96xf32, #tpu.memory_space<smem>>
    %77 = vector.broadcast %76 : f32 to vector<2x16xf32>
    %78 = arith.mulf %77, %17 : vector<2x16xf32>
    %79 = arith.addf %75, %78 : vector<2x16xf32>
    %c11 = arith.constant 11 : index
    %80 = memref.load %arg0[%c11] : memref<96xf32, #tpu.memory_space<smem>>
    %81 = vector.broadcast %80 : f32 to vector<2x16xf32>
    %82 = arith.mulf %81, %21 : vector<2x16xf32>
    %83 = arith.addf %79, %82 : vector<2x16xf32>
    %c12 = arith.constant 12 : index
    %84 = memref.load %arg0[%c12] : memref<96xf32, #tpu.memory_space<smem>>
    %85 = vector.broadcast %84 : f32 to vector<2x16xf32>
    %86 = arith.mulf %85, %18 : vector<2x16xf32>
    %87 = arith.addf %83, %86 : vector<2x16xf32>
    %c13 = arith.constant 13 : index
    %88 = memref.load %arg0[%c13] : memref<96xf32, #tpu.memory_space<smem>>
    %89 = vector.broadcast %88 : f32 to vector<2x16xf32>
    %90 = arith.mulf %89, %22 : vector<2x16xf32>
    %91 = arith.addf %87, %90 : vector<2x16xf32>
    %c14 = arith.constant 14 : index
    %92 = memref.load %arg0[%c14] : memref<96xf32, #tpu.memory_space<smem>>
    %93 = vector.broadcast %92 : f32 to vector<2x16xf32>
    %94 = arith.mulf %93, %19 : vector<2x16xf32>
    %95 = arith.addf %91, %94 : vector<2x16xf32>
    %c15 = arith.constant 15 : index
    %96 = memref.load %arg0[%c15] : memref<96xf32, #tpu.memory_space<smem>>
    %97 = vector.broadcast %96 : f32 to vector<2x16xf32>
    %98 = arith.mulf %97, %23 : vector<2x16xf32>
    %99 = arith.addf %95, %98 : vector<2x16xf32>
    %cst_34 = arith.constant 0.000000e+00 : f32
    %100 = vector.broadcast %cst_34 : f32 to vector<2x16xf32>
    %101 = arith.maximumf %99, %100 : vector<2x16xf32>
    %102 = arith.addf %9, %101 : vector<2x16xf32>
    %103 = arith.addf %3, %101 : vector<2x16xf32>
    %c2_35 = arith.constant 2 : index
    %104 = memref.load %arg1[%c2_35] : memref<12xf32, #tpu.memory_space<smem>>
    %cst_36 = arith.constant 0.000000e+00 : f32
    %105 = vector.broadcast %cst_36 : f32 to vector<2x16xf32>
    %106 = vector.broadcast %104 : f32 to vector<2x16xf32>
    %107 = arith.addf %106, %105 : vector<2x16xf32>
    %c16 = arith.constant 16 : index
    %108 = memref.load %arg0[%c16] : memref<96xf32, #tpu.memory_space<smem>>
    %109 = vector.broadcast %108 : f32 to vector<2x16xf32>
    %110 = arith.mulf %109, %16 : vector<2x16xf32>
    %111 = arith.addf %107, %110 : vector<2x16xf32>
    %c17 = arith.constant 17 : index
    %112 = memref.load %arg0[%c17] : memref<96xf32, #tpu.memory_space<smem>>
    %113 = vector.broadcast %112 : f32 to vector<2x16xf32>
    %114 = arith.mulf %113, %20 : vector<2x16xf32>
    %115 = arith.addf %111, %114 : vector<2x16xf32>
    %c18 = arith.constant 18 : index
    %116 = memref.load %arg0[%c18] : memref<96xf32, #tpu.memory_space<smem>>
    %117 = vector.broadcast %116 : f32 to vector<2x16xf32>
    %118 = arith.mulf %117, %17 : vector<2x16xf32>
    %119 = arith.addf %115, %118 : vector<2x16xf32>
    %c19 = arith.constant 19 : index
    %120 = memref.load %arg0[%c19] : memref<96xf32, #tpu.memory_space<smem>>
    %121 = vector.broadcast %120 : f32 to vector<2x16xf32>
    %122 = arith.mulf %121, %21 : vector<2x16xf32>
    %123 = arith.addf %119, %122 : vector<2x16xf32>
    %c20 = arith.constant 20 : index
    %124 = memref.load %arg0[%c20] : memref<96xf32, #tpu.memory_space<smem>>
    %125 = vector.broadcast %124 : f32 to vector<2x16xf32>
    %126 = arith.mulf %125, %18 : vector<2x16xf32>
    %127 = arith.addf %123, %126 : vector<2x16xf32>
    %c21 = arith.constant 21 : index
    %128 = memref.load %arg0[%c21] : memref<96xf32, #tpu.memory_space<smem>>
    %129 = vector.broadcast %128 : f32 to vector<2x16xf32>
    %130 = arith.mulf %129, %22 : vector<2x16xf32>
    %131 = arith.addf %127, %130 : vector<2x16xf32>
    %c22 = arith.constant 22 : index
    %132 = memref.load %arg0[%c22] : memref<96xf32, #tpu.memory_space<smem>>
    %133 = vector.broadcast %132 : f32 to vector<2x16xf32>
    %134 = arith.mulf %133, %19 : vector<2x16xf32>
    %135 = arith.addf %131, %134 : vector<2x16xf32>
    %c23 = arith.constant 23 : index
    %136 = memref.load %arg0[%c23] : memref<96xf32, #tpu.memory_space<smem>>
    %137 = vector.broadcast %136 : f32 to vector<2x16xf32>
    %138 = arith.mulf %137, %23 : vector<2x16xf32>
    %139 = arith.addf %135, %138 : vector<2x16xf32>
    %cst_37 = arith.constant 0.000000e+00 : f32
    %140 = vector.broadcast %cst_37 : f32 to vector<2x16xf32>
    %141 = arith.maximumf %139, %140 : vector<2x16xf32>
    %142 = arith.addf %10, %141 : vector<2x16xf32>
    %143 = arith.addf %5, %141 : vector<2x16xf32>
    %c3_38 = arith.constant 3 : index
    %144 = memref.load %arg1[%c3_38] : memref<12xf32, #tpu.memory_space<smem>>
    %cst_39 = arith.constant 0.000000e+00 : f32
    %145 = vector.broadcast %cst_39 : f32 to vector<2x16xf32>
    %146 = vector.broadcast %144 : f32 to vector<2x16xf32>
    %147 = arith.addf %146, %145 : vector<2x16xf32>
    %c24 = arith.constant 24 : index
    %148 = memref.load %arg0[%c24] : memref<96xf32, #tpu.memory_space<smem>>
    %149 = vector.broadcast %148 : f32 to vector<2x16xf32>
    %150 = arith.mulf %149, %16 : vector<2x16xf32>
    %151 = arith.addf %147, %150 : vector<2x16xf32>
    %c25 = arith.constant 25 : index
    %152 = memref.load %arg0[%c25] : memref<96xf32, #tpu.memory_space<smem>>
    %153 = vector.broadcast %152 : f32 to vector<2x16xf32>
    %154 = arith.mulf %153, %20 : vector<2x16xf32>
    %155 = arith.addf %151, %154 : vector<2x16xf32>
    %c26 = arith.constant 26 : index
    %156 = memref.load %arg0[%c26] : memref<96xf32, #tpu.memory_space<smem>>
    %157 = vector.broadcast %156 : f32 to vector<2x16xf32>
    %158 = arith.mulf %157, %17 : vector<2x16xf32>
    %159 = arith.addf %155, %158 : vector<2x16xf32>
    %c27 = arith.constant 27 : index
    %160 = memref.load %arg0[%c27] : memref<96xf32, #tpu.memory_space<smem>>
    %161 = vector.broadcast %160 : f32 to vector<2x16xf32>
    %162 = arith.mulf %161, %21 : vector<2x16xf32>
    %163 = arith.addf %159, %162 : vector<2x16xf32>
    %c28 = arith.constant 28 : index
    %164 = memref.load %arg0[%c28] : memref<96xf32, #tpu.memory_space<smem>>
    %165 = vector.broadcast %164 : f32 to vector<2x16xf32>
    %166 = arith.mulf %165, %18 : vector<2x16xf32>
    %167 = arith.addf %163, %166 : vector<2x16xf32>
    %c29 = arith.constant 29 : index
    %168 = memref.load %arg0[%c29] : memref<96xf32, #tpu.memory_space<smem>>
    %169 = vector.broadcast %168 : f32 to vector<2x16xf32>
    %170 = arith.mulf %169, %22 : vector<2x16xf32>
    %171 = arith.addf %167, %170 : vector<2x16xf32>
    %c30 = arith.constant 30 : index
    %172 = memref.load %arg0[%c30] : memref<96xf32, #tpu.memory_space<smem>>
    %173 = vector.broadcast %172 : f32 to vector<2x16xf32>
    %174 = arith.mulf %173, %19 : vector<2x16xf32>
    %175 = arith.addf %171, %174 : vector<2x16xf32>
    %c31 = arith.constant 31 : index
    %176 = memref.load %arg0[%c31] : memref<96xf32, #tpu.memory_space<smem>>
    %177 = vector.broadcast %176 : f32 to vector<2x16xf32>
    %178 = arith.mulf %177, %23 : vector<2x16xf32>
    %179 = arith.addf %175, %178 : vector<2x16xf32>
    %cst_40 = arith.constant 0.000000e+00 : f32
    %180 = vector.broadcast %cst_40 : f32 to vector<2x16xf32>
    %181 = arith.maximumf %179, %180 : vector<2x16xf32>
    %182 = arith.addf %11, %181 : vector<2x16xf32>
    %183 = arith.addf %7, %181 : vector<2x16xf32>
    %c2_41 = arith.constant 2 : index
    %c0_42 = arith.constant 0 : index
    %c0_43 = arith.constant 0 : index
    %184 = vector.load %arg2[%c2_41, %c0_42, %c0_43] : memref<6x16x16xf32, #tpu.memory_space<vmem>>, vector<1x16x16xf32>
    %185 = vector.shape_cast %184 : vector<1x16x16xf32> to vector<16x16xf32>
    %c3_44 = arith.constant 3 : index
    %c0_45 = arith.constant 0 : index
    %c0_46 = arith.constant 0 : index
    %186 = vector.load %arg2[%c3_44, %c0_45, %c0_46] : memref<6x16x16xf32, #tpu.memory_space<vmem>>, vector<1x16x16xf32>
    %187 = vector.shape_cast %186 : vector<1x16x16xf32> to vector<16x16xf32>
    %cst_47 = arith.constant dense<0.000000e+00> : vector<2x16xf32>
    %188 = tpu.matmul %63, %185, %cst_47 {dimension_numbers = #tpu.dot_dimension_numbers<[1], [0], [0], [1], [0, 0, 1, 1], [], []>} : vector<2x16xf32>, vector<16x16xf32>, vector<2x16xf32> -> vector<2x16xf32>
    %cst_48 = arith.constant dense<0.000000e+00> : vector<2x16xf32>
    %189 = tpu.matmul %103, %185, %cst_48 {dimension_numbers = #tpu.dot_dimension_numbers<[1], [0], [0], [1], [0, 0, 1, 1], [], []>} : vector<2x16xf32>, vector<16x16xf32>, vector<2x16xf32> -> vector<2x16xf32>
    %cst_49 = arith.constant dense<0.000000e+00> : vector<2x16xf32>
    %190 = tpu.matmul %143, %185, %cst_49 {dimension_numbers = #tpu.dot_dimension_numbers<[1], [0], [0], [1], [0, 0, 1, 1], [], []>} : vector<2x16xf32>, vector<16x16xf32>, vector<2x16xf32> -> vector<2x16xf32>
    %cst_50 = arith.constant dense<0.000000e+00> : vector<2x16xf32>
    %191 = tpu.matmul %183, %185, %cst_50 {dimension_numbers = #tpu.dot_dimension_numbers<[1], [0], [0], [1], [0, 0, 1, 1], [], []>} : vector<2x16xf32>, vector<16x16xf32>, vector<2x16xf32> -> vector<2x16xf32>
    %cst_51 = arith.constant dense<0.000000e+00> : vector<2x16xf32>
    %192 = tpu.matmul %63, %187, %cst_51 {dimension_numbers = #tpu.dot_dimension_numbers<[1], [0], [0], [1], [0, 0, 1, 1], [], []>} : vector<2x16xf32>, vector<16x16xf32>, vector<2x16xf32> -> vector<2x16xf32>
    %cst_52 = arith.constant dense<0.000000e+00> : vector<2x16xf32>
    %193 = tpu.matmul %103, %187, %cst_52 {dimension_numbers = #tpu.dot_dimension_numbers<[1], [0], [0], [1], [0, 0, 1, 1], [], []>} : vector<2x16xf32>, vector<16x16xf32>, vector<2x16xf32> -> vector<2x16xf32>
    %cst_53 = arith.constant dense<0.000000e+00> : vector<2x16xf32>
    %194 = tpu.matmul %143, %187, %cst_53 {dimension_numbers = #tpu.dot_dimension_numbers<[1], [0], [0], [1], [0, 0, 1, 1], [], []>} : vector<2x16xf32>, vector<16x16xf32>, vector<2x16xf32> -> vector<2x16xf32>
    %cst_54 = arith.constant dense<0.000000e+00> : vector<2x16xf32>
    %195 = tpu.matmul %183, %187, %cst_54 {dimension_numbers = #tpu.dot_dimension_numbers<[1], [0], [0], [1], [0, 0, 1, 1], [], []>} : vector<2x16xf32>, vector<16x16xf32>, vector<2x16xf32> -> vector<2x16xf32>
    %c4_55 = arith.constant 4 : index
    %196 = memref.load %arg1[%c4_55] : memref<12xf32, #tpu.memory_space<smem>>
    %cst_56 = arith.constant 0.000000e+00 : f32
    %197 = vector.broadcast %cst_56 : f32 to vector<2x16xf32>
    %198 = vector.broadcast %196 : f32 to vector<2x16xf32>
    %199 = arith.addf %198, %197 : vector<2x16xf32>
    %c32 = arith.constant 32 : index
    %200 = memref.load %arg0[%c32] : memref<96xf32, #tpu.memory_space<smem>>
    %201 = vector.broadcast %200 : f32 to vector<2x16xf32>
    %202 = arith.mulf %201, %188 : vector<2x16xf32>
    %203 = arith.addf %199, %202 : vector<2x16xf32>
    %c33 = arith.constant 33 : index
    %204 = memref.load %arg0[%c33] : memref<96xf32, #tpu.memory_space<smem>>
    %205 = vector.broadcast %204 : f32 to vector<2x16xf32>
    %206 = arith.mulf %205, %192 : vector<2x16xf32>
    %207 = arith.addf %203, %206 : vector<2x16xf32>
    %c34 = arith.constant 34 : index
    %208 = memref.load %arg0[%c34] : memref<96xf32, #tpu.memory_space<smem>>
    %209 = vector.broadcast %208 : f32 to vector<2x16xf32>
    %210 = arith.mulf %209, %189 : vector<2x16xf32>
    %211 = arith.addf %207, %210 : vector<2x16xf32>
    %c35 = arith.constant 35 : index
    %212 = memref.load %arg0[%c35] : memref<96xf32, #tpu.memory_space<smem>>
    %213 = vector.broadcast %212 : f32 to vector<2x16xf32>
    %214 = arith.mulf %213, %193 : vector<2x16xf32>
    %215 = arith.addf %211, %214 : vector<2x16xf32>
    %c36 = arith.constant 36 : index
    %216 = memref.load %arg0[%c36] : memref<96xf32, #tpu.memory_space<smem>>
    %217 = vector.broadcast %216 : f32 to vector<2x16xf32>
    %218 = arith.mulf %217, %190 : vector<2x16xf32>
    %219 = arith.addf %215, %218 : vector<2x16xf32>
    %c37 = arith.constant 37 : index
    %220 = memref.load %arg0[%c37] : memref<96xf32, #tpu.memory_space<smem>>
    %221 = vector.broadcast %220 : f32 to vector<2x16xf32>
    %222 = arith.mulf %221, %194 : vector<2x16xf32>
    %223 = arith.addf %219, %222 : vector<2x16xf32>
    %c38 = arith.constant 38 : index
    %224 = memref.load %arg0[%c38] : memref<96xf32, #tpu.memory_space<smem>>
    %225 = vector.broadcast %224 : f32 to vector<2x16xf32>
    %226 = arith.mulf %225, %191 : vector<2x16xf32>
    %227 = arith.addf %223, %226 : vector<2x16xf32>
    %c39 = arith.constant 39 : index
    %228 = memref.load %arg0[%c39] : memref<96xf32, #tpu.memory_space<smem>>
    %229 = vector.broadcast %228 : f32 to vector<2x16xf32>
    %230 = arith.mulf %229, %195 : vector<2x16xf32>
    %231 = arith.addf %227, %230 : vector<2x16xf32>
    %cst_57 = arith.constant 0.000000e+00 : f32
    %232 = vector.broadcast %cst_57 : f32 to vector<2x16xf32>
    %233 = arith.maximumf %231, %232 : vector<2x16xf32>
    %234 = arith.addf %62, %233 : vector<2x16xf32>
    %235 = arith.addf %63, %233 : vector<2x16xf32>
    %c5_58 = arith.constant 5 : index
    %236 = memref.load %arg1[%c5_58] : memref<12xf32, #tpu.memory_space<smem>>
    %cst_59 = arith.constant 0.000000e+00 : f32
    %237 = vector.broadcast %cst_59 : f32 to vector<2x16xf32>
    %238 = vector.broadcast %236 : f32 to vector<2x16xf32>
    %239 = arith.addf %238, %237 : vector<2x16xf32>
    %c40 = arith.constant 40 : index
    %240 = memref.load %arg0[%c40] : memref<96xf32, #tpu.memory_space<smem>>
    %241 = vector.broadcast %240 : f32 to vector<2x16xf32>
    %242 = arith.mulf %241, %188 : vector<2x16xf32>
    %243 = arith.addf %239, %242 : vector<2x16xf32>
    %c41 = arith.constant 41 : index
    %244 = memref.load %arg0[%c41] : memref<96xf32, #tpu.memory_space<smem>>
    %245 = vector.broadcast %244 : f32 to vector<2x16xf32>
    %246 = arith.mulf %245, %192 : vector<2x16xf32>
    %247 = arith.addf %243, %246 : vector<2x16xf32>
    %c42 = arith.constant 42 : index
    %248 = memref.load %arg0[%c42] : memref<96xf32, #tpu.memory_space<smem>>
    %249 = vector.broadcast %248 : f32 to vector<2x16xf32>
    %250 = arith.mulf %249, %189 : vector<2x16xf32>
    %251 = arith.addf %247, %250 : vector<2x16xf32>
    %c43 = arith.constant 43 : index
    %252 = memref.load %arg0[%c43] : memref<96xf32, #tpu.memory_space<smem>>
    %253 = vector.broadcast %252 : f32 to vector<2x16xf32>
    %254 = arith.mulf %253, %193 : vector<2x16xf32>
    %255 = arith.addf %251, %254 : vector<2x16xf32>
    %c44 = arith.constant 44 : index
    %256 = memref.load %arg0[%c44] : memref<96xf32, #tpu.memory_space<smem>>
    %257 = vector.broadcast %256 : f32 to vector<2x16xf32>
    %258 = arith.mulf %257, %190 : vector<2x16xf32>
    %259 = arith.addf %255, %258 : vector<2x16xf32>
    %c45 = arith.constant 45 : index
    %260 = memref.load %arg0[%c45] : memref<96xf32, #tpu.memory_space<smem>>
    %261 = vector.broadcast %260 : f32 to vector<2x16xf32>
    %262 = arith.mulf %261, %194 : vector<2x16xf32>
    %263 = arith.addf %259, %262 : vector<2x16xf32>
    %c46 = arith.constant 46 : index
    %264 = memref.load %arg0[%c46] : memref<96xf32, #tpu.memory_space<smem>>
    %265 = vector.broadcast %264 : f32 to vector<2x16xf32>
    %266 = arith.mulf %265, %191 : vector<2x16xf32>
    %267 = arith.addf %263, %266 : vector<2x16xf32>
    %c47 = arith.constant 47 : index
    %268 = memref.load %arg0[%c47] : memref<96xf32, #tpu.memory_space<smem>>
    %269 = vector.broadcast %268 : f32 to vector<2x16xf32>
    %270 = arith.mulf %269, %195 : vector<2x16xf32>
    %271 = arith.addf %267, %270 : vector<2x16xf32>
    %cst_60 = arith.constant 0.000000e+00 : f32
    %272 = vector.broadcast %cst_60 : f32 to vector<2x16xf32>
    %273 = arith.maximumf %271, %272 : vector<2x16xf32>
    %274 = arith.addf %102, %273 : vector<2x16xf32>
    %275 = arith.addf %103, %273 : vector<2x16xf32>
    %c6_61 = arith.constant 6 : index
    %276 = memref.load %arg1[%c6_61] : memref<12xf32, #tpu.memory_space<smem>>
    %cst_62 = arith.constant 0.000000e+00 : f32
    %277 = vector.broadcast %cst_62 : f32 to vector<2x16xf32>
    %278 = vector.broadcast %276 : f32 to vector<2x16xf32>
    %279 = arith.addf %278, %277 : vector<2x16xf32>
    %c48 = arith.constant 48 : index
    %280 = memref.load %arg0[%c48] : memref<96xf32, #tpu.memory_space<smem>>
    %281 = vector.broadcast %280 : f32 to vector<2x16xf32>
    %282 = arith.mulf %281, %188 : vector<2x16xf32>
    %283 = arith.addf %279, %282 : vector<2x16xf32>
    %c49 = arith.constant 49 : index
    %284 = memref.load %arg0[%c49] : memref<96xf32, #tpu.memory_space<smem>>
    %285 = vector.broadcast %284 : f32 to vector<2x16xf32>
    %286 = arith.mulf %285, %192 : vector<2x16xf32>
    %287 = arith.addf %283, %286 : vector<2x16xf32>
    %c50 = arith.constant 50 : index
    %288 = memref.load %arg0[%c50] : memref<96xf32, #tpu.memory_space<smem>>
    %289 = vector.broadcast %288 : f32 to vector<2x16xf32>
    %290 = arith.mulf %289, %189 : vector<2x16xf32>
    %291 = arith.addf %287, %290 : vector<2x16xf32>
    %c51 = arith.constant 51 : index
    %292 = memref.load %arg0[%c51] : memref<96xf32, #tpu.memory_space<smem>>
    %293 = vector.broadcast %292 : f32 to vector<2x16xf32>
    %294 = arith.mulf %293, %193 : vector<2x16xf32>
    %295 = arith.addf %291, %294 : vector<2x16xf32>
    %c52 = arith.constant 52 : index
    %296 = memref.load %arg0[%c52] : memref<96xf32, #tpu.memory_space<smem>>
    %297 = vector.broadcast %296 : f32 to vector<2x16xf32>
    %298 = arith.mulf %297, %190 : vector<2x16xf32>
    %299 = arith.addf %295, %298 : vector<2x16xf32>
    %c53 = arith.constant 53 : index
    %300 = memref.load %arg0[%c53] : memref<96xf32, #tpu.memory_space<smem>>
    %301 = vector.broadcast %300 : f32 to vector<2x16xf32>
    %302 = arith.mulf %301, %194 : vector<2x16xf32>
    %303 = arith.addf %299, %302 : vector<2x16xf32>
    %c54 = arith.constant 54 : index
    %304 = memref.load %arg0[%c54] : memref<96xf32, #tpu.memory_space<smem>>
    %305 = vector.broadcast %304 : f32 to vector<2x16xf32>
    %306 = arith.mulf %305, %191 : vector<2x16xf32>
    %307 = arith.addf %303, %306 : vector<2x16xf32>
    %c55 = arith.constant 55 : index
    %308 = memref.load %arg0[%c55] : memref<96xf32, #tpu.memory_space<smem>>
    %309 = vector.broadcast %308 : f32 to vector<2x16xf32>
    %310 = arith.mulf %309, %195 : vector<2x16xf32>
    %311 = arith.addf %307, %310 : vector<2x16xf32>
    %cst_63 = arith.constant 0.000000e+00 : f32
    %312 = vector.broadcast %cst_63 : f32 to vector<2x16xf32>
    %313 = arith.maximumf %311, %312 : vector<2x16xf32>
    %314 = arith.addf %142, %313 : vector<2x16xf32>
    %315 = arith.addf %143, %313 : vector<2x16xf32>
    %c7_64 = arith.constant 7 : index
    %316 = memref.load %arg1[%c7_64] : memref<12xf32, #tpu.memory_space<smem>>
    %cst_65 = arith.constant 0.000000e+00 : f32
    %317 = vector.broadcast %cst_65 : f32 to vector<2x16xf32>
    %318 = vector.broadcast %316 : f32 to vector<2x16xf32>
    %319 = arith.addf %318, %317 : vector<2x16xf32>
    %c56 = arith.constant 56 : index
    %320 = memref.load %arg0[%c56] : memref<96xf32, #tpu.memory_space<smem>>
    %321 = vector.broadcast %320 : f32 to vector<2x16xf32>
    %322 = arith.mulf %321, %188 : vector<2x16xf32>
    %323 = arith.addf %319, %322 : vector<2x16xf32>
    %c57 = arith.constant 57 : index
    %324 = memref.load %arg0[%c57] : memref<96xf32, #tpu.memory_space<smem>>
    %325 = vector.broadcast %324 : f32 to vector<2x16xf32>
    %326 = arith.mulf %325, %192 : vector<2x16xf32>
    %327 = arith.addf %323, %326 : vector<2x16xf32>
    %c58 = arith.constant 58 : index
    %328 = memref.load %arg0[%c58] : memref<96xf32, #tpu.memory_space<smem>>
    %329 = vector.broadcast %328 : f32 to vector<2x16xf32>
    %330 = arith.mulf %329, %189 : vector<2x16xf32>
    %331 = arith.addf %327, %330 : vector<2x16xf32>
    %c59 = arith.constant 59 : index
    %332 = memref.load %arg0[%c59] : memref<96xf32, #tpu.memory_space<smem>>
    %333 = vector.broadcast %332 : f32 to vector<2x16xf32>
    %334 = arith.mulf %333, %193 : vector<2x16xf32>
    %335 = arith.addf %331, %334 : vector<2x16xf32>
    %c60 = arith.constant 60 : index
    %336 = memref.load %arg0[%c60] : memref<96xf32, #tpu.memory_space<smem>>
    %337 = vector.broadcast %336 : f32 to vector<2x16xf32>
    %338 = arith.mulf %337, %190 : vector<2x16xf32>
    %339 = arith.addf %335, %338 : vector<2x16xf32>
    %c61 = arith.constant 61 : index
    %340 = memref.load %arg0[%c61] : memref<96xf32, #tpu.memory_space<smem>>
    %341 = vector.broadcast %340 : f32 to vector<2x16xf32>
    %342 = arith.mulf %341, %194 : vector<2x16xf32>
    %343 = arith.addf %339, %342 : vector<2x16xf32>
    %c62 = arith.constant 62 : index
    %344 = memref.load %arg0[%c62] : memref<96xf32, #tpu.memory_space<smem>>
    %345 = vector.broadcast %344 : f32 to vector<2x16xf32>
    %346 = arith.mulf %345, %191 : vector<2x16xf32>
    %347 = arith.addf %343, %346 : vector<2x16xf32>
    %c63 = arith.constant 63 : index
    %348 = memref.load %arg0[%c63] : memref<96xf32, #tpu.memory_space<smem>>
    %349 = vector.broadcast %348 : f32 to vector<2x16xf32>
    %350 = arith.mulf %349, %195 : vector<2x16xf32>
    %351 = arith.addf %347, %350 : vector<2x16xf32>
    %cst_66 = arith.constant 0.000000e+00 : f32
    %352 = vector.broadcast %cst_66 : f32 to vector<2x16xf32>
    %353 = arith.maximumf %351, %352 : vector<2x16xf32>
    %354 = arith.addf %182, %353 : vector<2x16xf32>
    %355 = arith.addf %183, %353 : vector<2x16xf32>
    %c4_67 = arith.constant 4 : index
    %c0_68 = arith.constant 0 : index
    %c0_69 = arith.constant 0 : index
    %356 = vector.load %arg2[%c4_67, %c0_68, %c0_69] : memref<6x16x16xf32, #tpu.memory_space<vmem>>, vector<1x16x16xf32>
    %357 = vector.shape_cast %356 : vector<1x16x16xf32> to vector<16x16xf32>
    %c5_70 = arith.constant 5 : index
    %c0_71 = arith.constant 0 : index
    %c0_72 = arith.constant 0 : index
    %358 = vector.load %arg2[%c5_70, %c0_71, %c0_72] : memref<6x16x16xf32, #tpu.memory_space<vmem>>, vector<1x16x16xf32>
    %359 = vector.shape_cast %358 : vector<1x16x16xf32> to vector<16x16xf32>
    %cst_73 = arith.constant dense<0.000000e+00> : vector<2x16xf32>
    %360 = tpu.matmul %235, %357, %cst_73 {dimension_numbers = #tpu.dot_dimension_numbers<[1], [0], [0], [1], [0, 0, 1, 1], [], []>} : vector<2x16xf32>, vector<16x16xf32>, vector<2x16xf32> -> vector<2x16xf32>
    %cst_74 = arith.constant dense<0.000000e+00> : vector<2x16xf32>
    %361 = tpu.matmul %275, %357, %cst_74 {dimension_numbers = #tpu.dot_dimension_numbers<[1], [0], [0], [1], [0, 0, 1, 1], [], []>} : vector<2x16xf32>, vector<16x16xf32>, vector<2x16xf32> -> vector<2x16xf32>
    %cst_75 = arith.constant dense<0.000000e+00> : vector<2x16xf32>
    %362 = tpu.matmul %315, %357, %cst_75 {dimension_numbers = #tpu.dot_dimension_numbers<[1], [0], [0], [1], [0, 0, 1, 1], [], []>} : vector<2x16xf32>, vector<16x16xf32>, vector<2x16xf32> -> vector<2x16xf32>
    %cst_76 = arith.constant dense<0.000000e+00> : vector<2x16xf32>
    %363 = tpu.matmul %355, %357, %cst_76 {dimension_numbers = #tpu.dot_dimension_numbers<[1], [0], [0], [1], [0, 0, 1, 1], [], []>} : vector<2x16xf32>, vector<16x16xf32>, vector<2x16xf32> -> vector<2x16xf32>
    %cst_77 = arith.constant dense<0.000000e+00> : vector<2x16xf32>
    %364 = tpu.matmul %235, %359, %cst_77 {dimension_numbers = #tpu.dot_dimension_numbers<[1], [0], [0], [1], [0, 0, 1, 1], [], []>} : vector<2x16xf32>, vector<16x16xf32>, vector<2x16xf32> -> vector<2x16xf32>
    %cst_78 = arith.constant dense<0.000000e+00> : vector<2x16xf32>
    %365 = tpu.matmul %275, %359, %cst_78 {dimension_numbers = #tpu.dot_dimension_numbers<[1], [0], [0], [1], [0, 0, 1, 1], [], []>} : vector<2x16xf32>, vector<16x16xf32>, vector<2x16xf32> -> vector<2x16xf32>
    %cst_79 = arith.constant dense<0.000000e+00> : vector<2x16xf32>
    %366 = tpu.matmul %315, %359, %cst_79 {dimension_numbers = #tpu.dot_dimension_numbers<[1], [0], [0], [1], [0, 0, 1, 1], [], []>} : vector<2x16xf32>, vector<16x16xf32>, vector<2x16xf32> -> vector<2x16xf32>
    %cst_80 = arith.constant dense<0.000000e+00> : vector<2x16xf32>
    %367 = tpu.matmul %355, %359, %cst_80 {dimension_numbers = #tpu.dot_dimension_numbers<[1], [0], [0], [1], [0, 0, 1, 1], [], []>} : vector<2x16xf32>, vector<16x16xf32>, vector<2x16xf32> -> vector<2x16xf32>
    %c8_81 = arith.constant 8 : index
    %368 = memref.load %arg1[%c8_81] : memref<12xf32, #tpu.memory_space<smem>>
    %cst_82 = arith.constant 0.000000e+00 : f32
    %369 = vector.broadcast %cst_82 : f32 to vector<2x16xf32>
    %370 = vector.broadcast %368 : f32 to vector<2x16xf32>
    %371 = arith.addf %370, %369 : vector<2x16xf32>
    %c64 = arith.constant 64 : index
    %372 = memref.load %arg0[%c64] : memref<96xf32, #tpu.memory_space<smem>>
    %373 = vector.broadcast %372 : f32 to vector<2x16xf32>
    %374 = arith.mulf %373, %360 : vector<2x16xf32>
    %375 = arith.addf %371, %374 : vector<2x16xf32>
    %c65 = arith.constant 65 : index
    %376 = memref.load %arg0[%c65] : memref<96xf32, #tpu.memory_space<smem>>
    %377 = vector.broadcast %376 : f32 to vector<2x16xf32>
    %378 = arith.mulf %377, %364 : vector<2x16xf32>
    %379 = arith.addf %375, %378 : vector<2x16xf32>
    %c66 = arith.constant 66 : index
    %380 = memref.load %arg0[%c66] : memref<96xf32, #tpu.memory_space<smem>>
    %381 = vector.broadcast %380 : f32 to vector<2x16xf32>
    %382 = arith.mulf %381, %361 : vector<2x16xf32>
    %383 = arith.addf %379, %382 : vector<2x16xf32>
    %c67 = arith.constant 67 : index
    %384 = memref.load %arg0[%c67] : memref<96xf32, #tpu.memory_space<smem>>
    %385 = vector.broadcast %384 : f32 to vector<2x16xf32>
    %386 = arith.mulf %385, %365 : vector<2x16xf32>
    %387 = arith.addf %383, %386 : vector<2x16xf32>
    %c68 = arith.constant 68 : index
    %388 = memref.load %arg0[%c68] : memref<96xf32, #tpu.memory_space<smem>>
    %389 = vector.broadcast %388 : f32 to vector<2x16xf32>
    %390 = arith.mulf %389, %362 : vector<2x16xf32>
    %391 = arith.addf %387, %390 : vector<2x16xf32>
    %c69 = arith.constant 69 : index
    %392 = memref.load %arg0[%c69] : memref<96xf32, #tpu.memory_space<smem>>
    %393 = vector.broadcast %392 : f32 to vector<2x16xf32>
    %394 = arith.mulf %393, %366 : vector<2x16xf32>
    %395 = arith.addf %391, %394 : vector<2x16xf32>
    %c70 = arith.constant 70 : index
    %396 = memref.load %arg0[%c70] : memref<96xf32, #tpu.memory_space<smem>>
    %397 = vector.broadcast %396 : f32 to vector<2x16xf32>
    %398 = arith.mulf %397, %363 : vector<2x16xf32>
    %399 = arith.addf %395, %398 : vector<2x16xf32>
    %c71 = arith.constant 71 : index
    %400 = memref.load %arg0[%c71] : memref<96xf32, #tpu.memory_space<smem>>
    %401 = vector.broadcast %400 : f32 to vector<2x16xf32>
    %402 = arith.mulf %401, %367 : vector<2x16xf32>
    %403 = arith.addf %399, %402 : vector<2x16xf32>
    %cst_83 = arith.constant 0.000000e+00 : f32
    %404 = vector.broadcast %cst_83 : f32 to vector<2x16xf32>
    %405 = arith.maximumf %403, %404 : vector<2x16xf32>
    %406 = arith.addf %234, %405 : vector<2x16xf32>
    %c9_84 = arith.constant 9 : index
    %407 = memref.load %arg1[%c9_84] : memref<12xf32, #tpu.memory_space<smem>>
    %cst_85 = arith.constant 0.000000e+00 : f32
    %408 = vector.broadcast %cst_85 : f32 to vector<2x16xf32>
    %409 = vector.broadcast %407 : f32 to vector<2x16xf32>
    %410 = arith.addf %409, %408 : vector<2x16xf32>
    %c72 = arith.constant 72 : index
    %411 = memref.load %arg0[%c72] : memref<96xf32, #tpu.memory_space<smem>>
    %412 = vector.broadcast %411 : f32 to vector<2x16xf32>
    %413 = arith.mulf %412, %360 : vector<2x16xf32>
    %414 = arith.addf %410, %413 : vector<2x16xf32>
    %c73 = arith.constant 73 : index
    %415 = memref.load %arg0[%c73] : memref<96xf32, #tpu.memory_space<smem>>
    %416 = vector.broadcast %415 : f32 to vector<2x16xf32>
    %417 = arith.mulf %416, %364 : vector<2x16xf32>
    %418 = arith.addf %414, %417 : vector<2x16xf32>
    %c74 = arith.constant 74 : index
    %419 = memref.load %arg0[%c74] : memref<96xf32, #tpu.memory_space<smem>>
    %420 = vector.broadcast %419 : f32 to vector<2x16xf32>
    %421 = arith.mulf %420, %361 : vector<2x16xf32>
    %422 = arith.addf %418, %421 : vector<2x16xf32>
    %c75 = arith.constant 75 : index
    %423 = memref.load %arg0[%c75] : memref<96xf32, #tpu.memory_space<smem>>
    %424 = vector.broadcast %423 : f32 to vector<2x16xf32>
    %425 = arith.mulf %424, %365 : vector<2x16xf32>
    %426 = arith.addf %422, %425 : vector<2x16xf32>
    %c76 = arith.constant 76 : index
    %427 = memref.load %arg0[%c76] : memref<96xf32, #tpu.memory_space<smem>>
    %428 = vector.broadcast %427 : f32 to vector<2x16xf32>
    %429 = arith.mulf %428, %362 : vector<2x16xf32>
    %430 = arith.addf %426, %429 : vector<2x16xf32>
    %c77 = arith.constant 77 : index
    %431 = memref.load %arg0[%c77] : memref<96xf32, #tpu.memory_space<smem>>
    %432 = vector.broadcast %431 : f32 to vector<2x16xf32>
    %433 = arith.mulf %432, %366 : vector<2x16xf32>
    %434 = arith.addf %430, %433 : vector<2x16xf32>
    %c78 = arith.constant 78 : index
    %435 = memref.load %arg0[%c78] : memref<96xf32, #tpu.memory_space<smem>>
    %436 = vector.broadcast %435 : f32 to vector<2x16xf32>
    %437 = arith.mulf %436, %363 : vector<2x16xf32>
    %438 = arith.addf %434, %437 : vector<2x16xf32>
    %c79 = arith.constant 79 : index
    %439 = memref.load %arg0[%c79] : memref<96xf32, #tpu.memory_space<smem>>
    %440 = vector.broadcast %439 : f32 to vector<2x16xf32>
    %441 = arith.mulf %440, %367 : vector<2x16xf32>
    %442 = arith.addf %438, %441 : vector<2x16xf32>
    %cst_86 = arith.constant 0.000000e+00 : f32
    %443 = vector.broadcast %cst_86 : f32 to vector<2x16xf32>
    %444 = arith.maximumf %442, %443 : vector<2x16xf32>
    %445 = arith.addf %274, %444 : vector<2x16xf32>
    %c10_87 = arith.constant 10 : index
    %446 = memref.load %arg1[%c10_87] : memref<12xf32, #tpu.memory_space<smem>>
    %cst_88 = arith.constant 0.000000e+00 : f32
    %447 = vector.broadcast %cst_88 : f32 to vector<2x16xf32>
    %448 = vector.broadcast %446 : f32 to vector<2x16xf32>
    %449 = arith.addf %448, %447 : vector<2x16xf32>
    %c80 = arith.constant 80 : index
    %450 = memref.load %arg0[%c80] : memref<96xf32, #tpu.memory_space<smem>>
    %451 = vector.broadcast %450 : f32 to vector<2x16xf32>
    %452 = arith.mulf %451, %360 : vector<2x16xf32>
    %453 = arith.addf %449, %452 : vector<2x16xf32>
    %c81 = arith.constant 81 : index
    %454 = memref.load %arg0[%c81] : memref<96xf32, #tpu.memory_space<smem>>
    %455 = vector.broadcast %454 : f32 to vector<2x16xf32>
    %456 = arith.mulf %455, %364 : vector<2x16xf32>
    %457 = arith.addf %453, %456 : vector<2x16xf32>
    %c82 = arith.constant 82 : index
    %458 = memref.load %arg0[%c82] : memref<96xf32, #tpu.memory_space<smem>>
    %459 = vector.broadcast %458 : f32 to vector<2x16xf32>
    %460 = arith.mulf %459, %361 : vector<2x16xf32>
    %461 = arith.addf %457, %460 : vector<2x16xf32>
    %c83 = arith.constant 83 : index
    %462 = memref.load %arg0[%c83] : memref<96xf32, #tpu.memory_space<smem>>
    %463 = vector.broadcast %462 : f32 to vector<2x16xf32>
    %464 = arith.mulf %463, %365 : vector<2x16xf32>
    %465 = arith.addf %461, %464 : vector<2x16xf32>
    %c84 = arith.constant 84 : index
    %466 = memref.load %arg0[%c84] : memref<96xf32, #tpu.memory_space<smem>>
    %467 = vector.broadcast %466 : f32 to vector<2x16xf32>
    %468 = arith.mulf %467, %362 : vector<2x16xf32>
    %469 = arith.addf %465, %468 : vector<2x16xf32>
    %c85 = arith.constant 85 : index
    %470 = memref.load %arg0[%c85] : memref<96xf32, #tpu.memory_space<smem>>
    %471 = vector.broadcast %470 : f32 to vector<2x16xf32>
    %472 = arith.mulf %471, %366 : vector<2x16xf32>
    %473 = arith.addf %469, %472 : vector<2x16xf32>
    %c86 = arith.constant 86 : index
    %474 = memref.load %arg0[%c86] : memref<96xf32, #tpu.memory_space<smem>>
    %475 = vector.broadcast %474 : f32 to vector<2x16xf32>
    %476 = arith.mulf %475, %363 : vector<2x16xf32>
    %477 = arith.addf %473, %476 : vector<2x16xf32>
    %c87 = arith.constant 87 : index
    %478 = memref.load %arg0[%c87] : memref<96xf32, #tpu.memory_space<smem>>
    %479 = vector.broadcast %478 : f32 to vector<2x16xf32>
    %480 = arith.mulf %479, %367 : vector<2x16xf32>
    %481 = arith.addf %477, %480 : vector<2x16xf32>
    %cst_89 = arith.constant 0.000000e+00 : f32
    %482 = vector.broadcast %cst_89 : f32 to vector<2x16xf32>
    %483 = arith.maximumf %481, %482 : vector<2x16xf32>
    %484 = arith.addf %314, %483 : vector<2x16xf32>
    %c11_90 = arith.constant 11 : index
    %485 = memref.load %arg1[%c11_90] : memref<12xf32, #tpu.memory_space<smem>>
    %cst_91 = arith.constant 0.000000e+00 : f32
    %486 = vector.broadcast %cst_91 : f32 to vector<2x16xf32>
    %487 = vector.broadcast %485 : f32 to vector<2x16xf32>
    %488 = arith.addf %487, %486 : vector<2x16xf32>
    %c88 = arith.constant 88 : index
    %489 = memref.load %arg0[%c88] : memref<96xf32, #tpu.memory_space<smem>>
    %490 = vector.broadcast %489 : f32 to vector<2x16xf32>
    %491 = arith.mulf %490, %360 : vector<2x16xf32>
    %492 = arith.addf %488, %491 : vector<2x16xf32>
    %c89 = arith.constant 89 : index
    %493 = memref.load %arg0[%c89] : memref<96xf32, #tpu.memory_space<smem>>
    %494 = vector.broadcast %493 : f32 to vector<2x16xf32>
    %495 = arith.mulf %494, %364 : vector<2x16xf32>
    %496 = arith.addf %492, %495 : vector<2x16xf32>
    %c90 = arith.constant 90 : index
    %497 = memref.load %arg0[%c90] : memref<96xf32, #tpu.memory_space<smem>>
    %498 = vector.broadcast %497 : f32 to vector<2x16xf32>
    %499 = arith.mulf %498, %361 : vector<2x16xf32>
    %500 = arith.addf %496, %499 : vector<2x16xf32>
    %c91 = arith.constant 91 : index
    %501 = memref.load %arg0[%c91] : memref<96xf32, #tpu.memory_space<smem>>
    %502 = vector.broadcast %501 : f32 to vector<2x16xf32>
    %503 = arith.mulf %502, %365 : vector<2x16xf32>
    %504 = arith.addf %500, %503 : vector<2x16xf32>
    %c92 = arith.constant 92 : index
    %505 = memref.load %arg0[%c92] : memref<96xf32, #tpu.memory_space<smem>>
    %506 = vector.broadcast %505 : f32 to vector<2x16xf32>
    %507 = arith.mulf %506, %362 : vector<2x16xf32>
    %508 = arith.addf %504, %507 : vector<2x16xf32>
    %c93 = arith.constant 93 : index
    %509 = memref.load %arg0[%c93] : memref<96xf32, #tpu.memory_space<smem>>
    %510 = vector.broadcast %509 : f32 to vector<2x16xf32>
    %511 = arith.mulf %510, %366 : vector<2x16xf32>
    %512 = arith.addf %508, %511 : vector<2x16xf32>
    %c94 = arith.constant 94 : index
    %513 = memref.load %arg0[%c94] : memref<96xf32, #tpu.memory_space<smem>>
    %514 = vector.broadcast %513 : f32 to vector<2x16xf32>
    %515 = arith.mulf %514, %363 : vector<2x16xf32>
    %516 = arith.addf %512, %515 : vector<2x16xf32>
    %c95 = arith.constant 95 : index
    %517 = memref.load %arg0[%c95] : memref<96xf32, #tpu.memory_space<smem>>
    %518 = vector.broadcast %517 : f32 to vector<2x16xf32>
    %519 = arith.mulf %518, %367 : vector<2x16xf32>
    %520 = arith.addf %516, %519 : vector<2x16xf32>
    %cst_92 = arith.constant 0.000000e+00 : f32
    %521 = vector.broadcast %cst_92 : f32 to vector<2x16xf32>
    %522 = arith.maximumf %520, %521 : vector<2x16xf32>
    %523 = arith.addf %354, %522 : vector<2x16xf32>
    %c0_93 = arith.constant 0 : index
    %c0_94 = arith.constant 0 : index
    %c0_95 = arith.constant 0 : index
    %524 = vector.load %arg4[%c0_93, %c0_94, %c0_95] : memref<4x16x128xf32, #tpu.memory_space<vmem>>, vector<1x16x128xf32>
    %525 = vector.shape_cast %524 : vector<1x16x128xf32> to vector<16x128xf32>
    %cst_96 = arith.constant dense<0.000000e+00> : vector<2x128xf32>
    %526 = tpu.matmul %406, %525, %cst_96 {dimension_numbers = #tpu.dot_dimension_numbers<[1], [0], [0], [1], [0, 0, 1, 1], [], []>} : vector<2x16xf32>, vector<16x128xf32>, vector<2x128xf32> -> vector<2x128xf32>
    %c1_97 = arith.constant 1 : index
    %c0_98 = arith.constant 0 : index
    %c0_99 = arith.constant 0 : index
    %527 = vector.load %arg4[%c1_97, %c0_98, %c0_99] : memref<4x16x128xf32, #tpu.memory_space<vmem>>, vector<1x16x128xf32>
    %528 = vector.shape_cast %527 : vector<1x16x128xf32> to vector<16x128xf32>
    %cst_100 = arith.constant dense<0.000000e+00> : vector<2x128xf32>
    %529 = tpu.matmul %445, %528, %cst_100 {dimension_numbers = #tpu.dot_dimension_numbers<[1], [0], [0], [1], [0, 0, 1, 1], [], []>} : vector<2x16xf32>, vector<16x128xf32>, vector<2x128xf32> -> vector<2x128xf32>
    %530 = arith.addf %526, %529 : vector<2x128xf32>
    %c2_101 = arith.constant 2 : index
    %c0_102 = arith.constant 0 : index
    %c0_103 = arith.constant 0 : index
    %531 = vector.load %arg4[%c2_101, %c0_102, %c0_103] : memref<4x16x128xf32, #tpu.memory_space<vmem>>, vector<1x16x128xf32>
    %532 = vector.shape_cast %531 : vector<1x16x128xf32> to vector<16x128xf32>
    %cst_104 = arith.constant dense<0.000000e+00> : vector<2x128xf32>
    %533 = tpu.matmul %484, %532, %cst_104 {dimension_numbers = #tpu.dot_dimension_numbers<[1], [0], [0], [1], [0, 0, 1, 1], [], []>} : vector<2x16xf32>, vector<16x128xf32>, vector<2x128xf32> -> vector<2x128xf32>
    %534 = arith.addf %530, %533 : vector<2x128xf32>
    %c3_105 = arith.constant 3 : index
    %c0_106 = arith.constant 0 : index
    %c0_107 = arith.constant 0 : index
    %535 = vector.load %arg4[%c3_105, %c0_106, %c0_107] : memref<4x16x128xf32, #tpu.memory_space<vmem>>, vector<1x16x128xf32>
    %536 = vector.shape_cast %535 : vector<1x16x128xf32> to vector<16x128xf32>
    %cst_108 = arith.constant dense<0.000000e+00> : vector<2x128xf32>
    %537 = tpu.matmul %523, %536, %cst_108 {dimension_numbers = #tpu.dot_dimension_numbers<[1], [0], [0], [1], [0, 0, 1, 1], [], []>} : vector<2x16xf32>, vector<16x128xf32>, vector<2x128xf32> -> vector<2x128xf32>
    %538 = arith.addf %534, %537 : vector<2x128xf32>
    %cst_109 = arith.constant 0.333333343 : f32
    %539 = vector.broadcast %cst_109 : f32 to vector<2x128xf32>
    %540 = arith.mulf %538, %539 : vector<2x128xf32>
    %c0_110 = arith.constant 0 : index
    %c0_111 = arith.constant 0 : index
    %541 = vector.load %arg5[%c0_110, %c0_111] : memref<1x128xf32, #tpu.memory_space<vmem>>, vector<1x128xf32>
    %542 = vector.broadcast %541 : vector<1x128xf32> to vector<2x128xf32>
    %543 = arith.addf %540, %542 : vector<2x128xf32>
    %cst_112 = arith.constant 0.000000e+00 : f32
    %544 = vector.broadcast %cst_112 : f32 to vector<2x128xf32>
    %545 = arith.maximumf %543, %544 : vector<2x128xf32>
    %cst_113 = arith.constant dense<0.000000e+00> : vector<128xf32>
    %546 = vector.multi_reduction <add>, %545, %cst_113 [0] : vector<2x128xf32> to vector<128xf32>
    %547 = vector.shape_cast %546 : vector<128xf32> to vector<1x128xf32>
    %cst_114 = arith.constant 2.000000e+00 : f32
    %548 = vector.broadcast %cst_114 : f32 to vector<1x128xf32>
    %549 = arith.divf %547, %548 : vector<1x128xf32>
    %550 = arith.mulf %545, %545 : vector<2x128xf32>
    %cst_115 = arith.constant dense<0.000000e+00> : vector<128xf32>
    %551 = vector.multi_reduction <add>, %550, %cst_115 [0] : vector<2x128xf32> to vector<128xf32>
    %552 = vector.shape_cast %551 : vector<128xf32> to vector<1x128xf32>
    %cst_116 = arith.constant 2.000000e+00 : f32
    %553 = vector.broadcast %cst_116 : f32 to vector<1x128xf32>
    %554 = arith.divf %552, %553 : vector<1x128xf32>
    %555 = arith.mulf %549, %549 : vector<1x128xf32>
    %556 = arith.subf %554, %555 : vector<1x128xf32>
    %cst_117 = arith.constant 0.000000e+00 : f32
    %557 = vector.broadcast %cst_117 : f32 to vector<1x128xf32>
    %558 = arith.maximumf %556, %557 : vector<1x128xf32>
    %c0_118 = arith.constant 0 : index
    %c0_119 = arith.constant 0 : index
    %559 = vector.load %arg6[%c0_118, %c0_119] : memref<1x128xf32, #tpu.memory_space<vmem>>, vector<1x128xf32>
    %cst_120 = arith.constant 9.99999974E-6 : f32
    %560 = vector.broadcast %cst_120 : f32 to vector<1x128xf32>
    %561 = arith.addf %558, %560 : vector<1x128xf32>
    %562 = math.rsqrt %561 : vector<1x128xf32>
    %563 = arith.mulf %559, %562 : vector<1x128xf32>
    %564 = vector.broadcast %563 : vector<1x128xf32> to vector<2x128xf32>
    %565 = arith.mulf %545, %564 : vector<2x128xf32>
    %c0_121 = arith.constant 0 : index
    %c0_122 = arith.constant 0 : index
    %566 = vector.load %arg7[%c0_121, %c0_122] : memref<1x128xf32, #tpu.memory_space<vmem>>, vector<1x128xf32>
    %567 = arith.mulf %549, %563 : vector<1x128xf32>
    %568 = arith.subf %566, %567 : vector<1x128xf32>
    %569 = vector.broadcast %568 : vector<1x128xf32> to vector<2x128xf32>
    %570 = arith.addf %565, %569 : vector<2x128xf32>
    %c0_123 = arith.constant 0 : index
    %c0_124 = arith.constant 0 : index
    %571 = vector.load %arg8[%c0_123, %c0_124] : memref<128x128xf32, #tpu.memory_space<vmem>>, vector<128x128xf32>
    %cst_125 = arith.constant dense<0.000000e+00> : vector<2x128xf32>
    %572 = tpu.matmul %570, %571, %cst_125 {dimension_numbers = #tpu.dot_dimension_numbers<[1], [0], [0], [1], [0, 0, 1, 1], [], []>} : vector<2x128xf32>, vector<128x128xf32>, vector<2x128xf32> -> vector<2x128xf32>
    %c0_126 = arith.constant 0 : index
    %c0_127 = arith.constant 0 : index
    %573 = vector.load %arg9[%c0_126, %c0_127] : memref<1x128xf32, #tpu.memory_space<vmem>>, vector<1x128xf32>
    %574 = vector.broadcast %573 : vector<1x128xf32> to vector<2x128xf32>
    %575 = arith.addf %572, %574 : vector<2x128xf32>
    %cst_128 = arith.constant 0.000000e+00 : f32
    %576 = vector.broadcast %cst_128 : f32 to vector<2x128xf32>
    %577 = arith.maximumf %575, %576 : vector<2x128xf32>
    %cst_129 = arith.constant dense<0.000000e+00> : vector<128xf32>
    %578 = vector.multi_reduction <add>, %577, %cst_129 [0] : vector<2x128xf32> to vector<128xf32>
    %579 = vector.shape_cast %578 : vector<128xf32> to vector<1x128xf32>
    %cst_130 = arith.constant 2.000000e+00 : f32
    %580 = vector.broadcast %cst_130 : f32 to vector<1x128xf32>
    %581 = arith.divf %579, %580 : vector<1x128xf32>
    %582 = arith.mulf %577, %577 : vector<2x128xf32>
    %cst_131 = arith.constant dense<0.000000e+00> : vector<128xf32>
    %583 = vector.multi_reduction <add>, %582, %cst_131 [0] : vector<2x128xf32> to vector<128xf32>
    %584 = vector.shape_cast %583 : vector<128xf32> to vector<1x128xf32>
    %cst_132 = arith.constant 2.000000e+00 : f32
    %585 = vector.broadcast %cst_132 : f32 to vector<1x128xf32>
    %586 = arith.divf %584, %585 : vector<1x128xf32>
    %587 = arith.mulf %581, %581 : vector<1x128xf32>
    %588 = arith.subf %586, %587 : vector<1x128xf32>
    %cst_133 = arith.constant 0.000000e+00 : f32
    %589 = vector.broadcast %cst_133 : f32 to vector<1x128xf32>
    %590 = arith.maximumf %588, %589 : vector<1x128xf32>
    %c0_134 = arith.constant 0 : index
    %c0_135 = arith.constant 0 : index
    %591 = vector.load %arg10[%c0_134, %c0_135] : memref<1x128xf32, #tpu.memory_space<vmem>>, vector<1x128xf32>
    %cst_136 = arith.constant 9.99999974E-6 : f32
    %592 = vector.broadcast %cst_136 : f32 to vector<1x128xf32>
    %593 = arith.addf %590, %592 : vector<1x128xf32>
    %594 = math.rsqrt %593 : vector<1x128xf32>
    %595 = arith.mulf %591, %594 : vector<1x128xf32>
    %596 = vector.broadcast %595 : vector<1x128xf32> to vector<2x128xf32>
    %597 = arith.mulf %577, %596 : vector<2x128xf32>
    %c0_137 = arith.constant 0 : index
    %c0_138 = arith.constant 0 : index
    %598 = vector.load %arg11[%c0_137, %c0_138] : memref<1x128xf32, #tpu.memory_space<vmem>>, vector<1x128xf32>
    %599 = arith.mulf %581, %595 : vector<1x128xf32>
    %600 = arith.subf %598, %599 : vector<1x128xf32>
    %601 = vector.broadcast %600 : vector<1x128xf32> to vector<2x128xf32>
    %602 = arith.addf %597, %601 : vector<2x128xf32>
    %c0_139 = arith.constant 0 : index
    %c0_140 = arith.constant 0 : index
    %603 = vector.load %arg12[%c0_139, %c0_140] : memref<128x128xf32, #tpu.memory_space<vmem>>, vector<128x128xf32>
    %cst_141 = arith.constant dense<0.000000e+00> : vector<2x128xf32>
    %604 = tpu.matmul %602, %603, %cst_141 {dimension_numbers = #tpu.dot_dimension_numbers<[1], [0], [0], [1], [0, 0, 1, 1], [], []>} : vector<2x128xf32>, vector<128x128xf32>, vector<2x128xf32> -> vector<2x128xf32>
    %c0_142 = arith.constant 0 : index
    %c0_143 = arith.constant 0 : index
    %605 = vector.load %arg13[%c0_142, %c0_143] : memref<1x128xf32, #tpu.memory_space<vmem>>, vector<1x128xf32>
    %606 = vector.broadcast %605 : vector<1x128xf32> to vector<2x128xf32>
    %607 = arith.addf %604, %606 : vector<2x128xf32>
    %cst_144 = arith.constant dense<0xFF800000> : vector<2xf32>
    %608 = vector.multi_reduction <maximumf>, %607, %cst_144 [1] : vector<2x128xf32> to vector<2xf32>
    %609 = vector.shape_cast %608 : vector<2xf32> to vector<2x1xf32>
    %610 = vector.broadcast %609 : vector<2x1xf32> to vector<2x128xf32>
    %611 = arith.subf %607, %610 : vector<2x128xf32>
    %612 = math.exp %611 : vector<2x128xf32>
    %cst_145 = arith.constant dense<0.000000e+00> : vector<2xf32>
    %613 = vector.multi_reduction <add>, %612, %cst_145 [1] : vector<2x128xf32> to vector<2xf32>
    %614 = vector.shape_cast %613 : vector<2xf32> to vector<2x1xf32>
    %615 = vector.broadcast %614 : vector<2x1xf32> to vector<2x128xf32>
    %616 = arith.divf %612, %615 : vector<2x128xf32>
    %c0_146 = arith.constant 0 : index
    %c0_147 = arith.constant 0 : index
    %617 = vector.load %arg14[%c0_146, %c0_147] : memref<2x128xf32, #tpu.memory_space<vmem>>, vector<2x128xf32>
    tpu.vector_store %arg14[%c0_146, %c0_147], %616 {strides = array<i32>} : memref<2x128xf32, #tpu.memory_space<vmem>>, vector<2x128xf32>,
    return
  }
}

</mosaic_0001>

<bundles_post_ra>
// kernel: tpu_custom_call.1
= control target key start
LH: loop header
LB: loop body
LE: loop exit
PB: predicated region body
PF: predicated region fallthrough
CT: control target
= control target key end

     0   :  { %s4596_s0 = inlined_call_operand.hbm [shape: f32[96], index: 0, kind: input, shape index: {}]   ;;  %s4597_s1 = inlined_call_operand.vmem [shape: f32[12], index: 1, kind: input, shape index: {}]   ;;  %s4598_s2 = inlined_call_operand.hbm [shape: f32[6,16,16], index: 2, kind: input, shape index: {}]   ;;  %s4599_s3 = inlined_call_operand.vmem [shape: f32[4,2,16], index: 3, kind: input, shape index: {}]   ;;  %s4600_s4 = inlined_call_operand.hbm [shape: f32[4,16,128], index: 4, kind: input, shape index: {}]   ;;  %s4601_s5 = inlined_call_operand.vmem [shape: f32[1,128], index: 5, kind: input, shape index: {}]   ;;  %s4602_s6 = inlined_call_operand.vmem [shape: f32[1,128], index: 6, kind: input, shape index: {}]   ;;  %s4603_s7 = inlined_call_operand.vmem [shape: f32[1,128], index: 7, kind: input, shape index: {}]   ;;  %s4604_s8 = inlined_call_operand.hbm [shape: f32[128,128], index: 8, kind: input, shape index: {}]   ;;  %s4605_s9 = inlined_call_operand.vmem [shape: f32[1,128], index: 9, kind: input, shape index: {}]   ;;  %s4606_s10 = inlined_call_operand.vmem [shape: f32[1,128], index: 10, kind: input, shape index: {}]   ;;  %s4607_s11 = inlined_call_operand.vmem [shape: f32[1,128], index: 11, kind: input, shape index: {}]   ;;  %s4608_s12 = inlined_call_operand.hbm [shape: f32[128,128], index: 12, kind: input, shape index: {}]   ;;  %s4609_s13 = inlined_call_operand.vmem [shape: f32[1,128], index: 13, kind: input, shape index: {}]   ;;  %s4610_s14 = inlined_call_operand.hbm [shape: f32[2,128], index: 14, kind: output, shape index: {}]  }
   0x1   :  { %4624 = sst [smem:[#allocation24_spill]] %s4601_s5 }
   0x2   :  { %4625 = sst [smem:[#allocation25_spill]] %s4602_s6 }
   0x3   :  { %4626 = sst [smem:[#allocation26_spill]] %s4603_s7 }
   0x4   :  { %4627 = sst [smem:[#allocation27_spill]] %s4605_s9 }
   0x5   :  { %4628 = sst [smem:[#allocation28_spill]] %s4606_s10 }
   0x6   :  { %4629 = sst [smem:[#allocation29_spill]] %s4607_s11 }
   0x7   :  { %4630 = sst [smem:[#allocation30_spill]] %s4609_s13 }
   0x8   :  { %4631 = sst [smem:[#allocation31_spill]] %s4610_s14 }
   0x9   :  { %19 = vsyncpa [#allocation5], 0 }
   0xa   :  { %20 = vsyncpa [#allocation6], 0 }
   0xb   :  { %21 = vsyncpa [#allocation3], 0 }
   0xc   :  { %22 = vsyncpa [#allocation10], 0 }
   0xd   :  { %23 = vsyncpa [#allocation13], 0 }
   0xe   :  { %24 = vsyncpa [#allocation4], 0  ;;  %s3762_s29 = smov [#allocation9]   ;;  %s39_s17 = sshll.u32 %s4597_s1, 4  ;;  %s3852_s17 = int_to_ptr.vmem [resolvable:$true] %s39_s17 }
   0xf   :  { %s62_s30 = sshll.u32 %s3762_s29, 4  ;;  %s3618_s20 = scalar_lea.hbm %s4600_s4, 1024  ;;  %s63_s30 = int_to_ptr.vmem [resolvable:$true] %s62_s30 }
  0x10   :  { %p3619_p0 = scmp.ne.s32.totalorder %s4600_s4, %s3618_s20  ;;  %p3622_p1 = scmp.lt.u32.totalorder %s3618_s20, %s4600_s4 }
  0x12   :  { %p3624_p2 = pnand %p3622_p1, %p3619_p0 }
  0x14   :  { %3627 = shalt.err (!%p3624_p2)
}
  0x15   :  { %s3628_s25 = scalar_lea.vmem %s63_s30, 1024  ;;  %p3633_p4 = scmp.lt.s32.totalorder %s63_s30, %s63_s30 }
  0x16   :  { %p3629_p3 = scmp.ne.s32.totalorder %s63_s30, %s3628_s25  ;;  %p3634_p5 = scmp.lt.s32.totalorder %s3628_s25, %s3628_s25 }
  0x18   :  { %p3635_p6 = por %p3634_p5, %p3633_p4 }
  0x1a   :  { %p3636_p7 = pnand %p3635_p6, %p3629_p3 }
  0x1c   :  { %3639 = shalt.err (!%p3636_p7)
}
  0x1d   :  { %s3763_s1 = smov 128   ;;  %s3764_s26 = smov 8  }
  0x1e   :  { %68 = dma.hbm_to_vmem [thread:$0]  %s4600_s4, 1024, %s63_s30, [#allocation10], %s3763_s1, %s3763_s1, %s3764_s26  }
  0x1f   :  { %s3640_s16 = scalar_lea.hbm %s4596_s0, 16 }
  0x20   :  { %p3641_p8 = scmp.ne.s32.totalorder %s4596_s0, %s3640_s16  ;;  %p3644_p9 = scmp.lt.u32.totalorder %s3640_s16, %s4596_s0 }
  0x22   :  { %p3646_p10 = pnand %p3644_p9, %p3641_p8 }
  0x24   :  { %3649 = shalt.err (!%p3646_p10)
}
  0x25   :  { %s3765_s22 = smov [#allocation2]   ;;  %s3650_s4 = scalar_lea.vmem %s3852_s17, 16 }
  0x26   :  { %32 = dma.hbm_to_smem %s4596_s0, 16, %s3765_s22, [#allocation5]  }
  0x27   :  { %p3651_p11 = scmp.ne.s32.totalorder %s3852_s17, %s3650_s4  ;;  %p3655_p12 = scmp.lt.s32.totalorder %s3852_s17, %s3852_s17 }
  0x28   :  { %p3656_p13 = scmp.lt.s32.totalorder %s3650_s4, %s3650_s4 }
  0x2a   :  { %p3657_p0 = por %p3656_p13, %p3655_p12 }
  0x2c   :  { %p3658_p1 = pnand %p3657_p0, %p3651_p11 }
  0x2e   :  { %3661 = shalt.err (!%p3658_p1)
}
  0x2f   :  { %s3766_s30 = smov [#allocation7]   ;;  %s3767_s25 = smov [#allocation8]  }
  0x30   :  { %42 = dma.vmem_to_smem %s3852_s17, 16, %s3766_s30, [#allocation6]  }
  0x31   :  { %s48_s27 = sshll.u32 %s3767_s25, 4  ;;  %s3768_s28 = smov [#allocation11]   ;;  %s49_s27 = int_to_ptr.vmem [resolvable:$true] %s48_s27 }
  0x32   :  { %s80_s29 = sshll.u32 %s3768_s28, 4  ;;  %s3662_s0 = scalar_lea.hbm %s4598_s2, 1536  ;;  %s81_s29 = int_to_ptr.vmem [resolvable:$true] %s80_s29 }
  0x33   :  { %p3663_p2 = scmp.ne.s32.totalorder %s4598_s2, %s3662_s0  ;;  %p3666_p3 = scmp.lt.u32.totalorder %s3662_s0, %s4598_s2 }
  0x35   :  { %p3668_p4 = pnand %p3666_p3, %p3663_p2 }
  0x37   :  { %3671 = shalt.err (!%p3668_p4)
}
  0x38   :  { %s3672_s17 = scalar_lea.vmem %s49_s27, 1536  ;;  %p3677_p6 = scmp.lt.s32.totalorder %s49_s27, %s49_s27 }
  0x39   :  { %p3673_p5 = scmp.ne.s32.totalorder %s49_s27, %s3672_s17  ;;  %p3678_p7 = scmp.lt.s32.totalorder %s3672_s17, %s3672_s17 }
  0x3b   :  { %p3679_p8 = por %p3678_p7, %p3677_p6 }
  0x3d   :  { %p3680_p9 = pnand %p3679_p8, %p3673_p5 }
  0x3f   :  { %3683 = shalt.err (!%p3680_p9)
}
  0x40   :  { %54 = dma.hbm_to_vmem [thread:$0]  %s4598_s2, 1536, %s49_s27, [#allocation3], %s3763_s1, %s3763_s1, %s3764_s26  }
  0x41   :  { %s3684_s30 = scalar_lea.hbm %s4604_s8, 2048 }
  0x42   :  { %p3685_p10 = scmp.ne.s32.totalorder %s4604_s8, %s3684_s30  ;;  %p3688_p11 = scmp.lt.u32.totalorder %s3684_s30, %s4604_s8 }
  0x44   :  { %p3690_p12 = pnand %p3688_p11, %p3685_p10 }
  0x46   :  { %3693 = shalt.err (!%p3690_p12)
}
  0x47   :  { %s3694_s0 = scalar_lea.vmem %s81_s29, 2048  ;;  %p3699_p0 = scmp.lt.s32.totalorder %s81_s29, %s81_s29 }
  0x48   :  { %p3695_p13 = scmp.ne.s32.totalorder %s81_s29, %s3694_s0  ;;  %p3700_p1 = scmp.lt.s32.totalorder %s3694_s0, %s3694_s0 }
  0x4a   :  { %p3701_p2 = por %p3700_p1, %p3699_p0 }
  0x4c   :  { %p3702_p3 = pnand %p3701_p2, %p3695_p13 }
  0x4e   :  { %3705 = shalt.err (!%p3702_p3)
}
  0x4f   :  { %86 = dma.hbm_to_vmem [thread:$0]  %s4604_s8, 2048, %s81_s29, [#allocation10], %s3763_s1, %s3763_s1, %s3764_s26  }
  0x50   :  { %s3769_s18 = smov [#allocation12]   ;;  %s3706_s17 = scalar_lea.hbm %s4608_s12, 2048 }
  0x51   :  { %s98_s19 = sshll.u32 %s3769_s18, 4  ;;  %p3707_p4 = scmp.ne.s32.totalorder %s4608_s12, %s3706_s17  ;;  %s99_s19 = int_to_ptr.vmem [resolvable:$true] %s98_s19 }
  0x52   :  { %p3710_p5 = scmp.lt.u32.totalorder %s3706_s17, %s4608_s12 }
  0x54   :  { %p3712_p6 = pnand %p3710_p5, %p3707_p4 }
  0x56   :  { %3715 = shalt.err (!%p3712_p6)
}
  0x57   :  { %s3716_s30 = scalar_lea.vmem %s99_s19, 2048  ;;  %p3721_p8 = scmp.lt.s32.totalorder %s99_s19, %s99_s19 }
  0x58   :  { %p3717_p7 = scmp.ne.s32.totalorder %s99_s19, %s3716_s30  ;;  %p3722_p9 = scmp.lt.s32.totalorder %s3716_s30, %s3716_s30 }
  0x5a   :  { %p3723_p10 = por %p3722_p9, %p3721_p8 }
  0x5c   :  { %p3724_p11 = pnand %p3723_p10, %p3717_p7 }
  0x5e   :  { %3727 = shalt.err (!%p3724_p11)
}
  0x5f   :  { %104 = dma.hbm_to_vmem [thread:$0]  %s4608_s12, 2048, %s99_s19, [#allocation13], %s3763_s1, %s3763_s1, %s3764_s26  }
  0x60   :  { %3750 = dma.done.wait [#allocation5], 16  }
  0x61   :  { %3751 = vsyncadd [#allocation5], 4294967280 }
  0x62   :  { %3752 = dma.done.wait [#allocation6], 16  }
  0x63   :  { %3753 = vsyncadd [#allocation6], 4294967280 }
  0x64   :  { %3754 = dma.done.wait [#allocation3], 1536  }
  0x65   :  { %3755 = vsyncadd [#allocation3], 4294965760 }
  0x66   :  { %3756 = dma.done.wait [#allocation10], 3072  }
  0x67   :  { %3757 = vsyncadd [#allocation10], 4294964224 }
  0x68   :  { %3758 = dma.done.wait [#allocation13], 2048  }
  0x69   :  { %3759 = vsyncadd [#allocation13], 4294965248 }
  0x6a   :  { %125 = sfence }
  0x6b   :  { %v133_v0 = vld [vmem:[#allocation8] sm:$0xff]  ;;  %v134_v1 = vld [vmem:[#allocation8 + $0x8] sm:$0xff]  ;;  %v4616_v2 = vmov 0.0|0.0   ;;  %vm3771_vm0 = vmmov 0   ;;  %v4618_v4 = vmov 0.0   ;;  %v136_v5 = vld [vmem:[#allocation8 + $0x10] sm:$0xff] }
  0x6c   :  { %3460 = vmatprep.subr.bf16.mxu1 %v4616_v2  ;;  %v3461_v3 = vpack.c.bf16 %v134_v1, %v133_v0  ;;  %3198 = vmatprep.mubr.msk.f32.mxu1 %vm3771_vm0, %v4618_v4  ;;  %v137_v6 = vld [vmem:[#allocation8 + $0x18] sm:$0xff]  ;;  %vm138_vm1 = vcmask 130048   ;;  %v864_v12 = vld [vmem:[#allocation8 + $0x20] sm:$0xff]  ;;  %v865_v13 = vld [vmem:[#allocation8 + $0x28] sm:$0xff]  ;;  %s4005_s2 = sld [smem:[#allocation2 + $0x8]]  ;;  %s4013_s20 = sld [smem:[#allocation7 + $0x1]] }
  0x6d   :  { %3472 = vmatprep.subr.bf16.mxu0 %v4616_v2  ;;  %v3473_v7 = vpack.c.bf16 %v137_v6, %v136_v5  ;;  %3226 = vmatprep.mubr.msk.f32.mxu0 %vm3771_vm0, %v4618_v4  ;;  %v3940_v8 = vld [vmem:[%s4599_s3] sm:$0x3]  ;;  %v3951_v9 = vld [vmem:[%s4599_s3 + $0x2] sm:$0x3]  ;;  %v3966_v10 = vld [vmem:[%s4599_s3 + $0x4] sm:$0x3]  ;;  %v3997_v14 = vpack.c.bf16 %v865_v13, %v864_v12 }
  0x6e   :  { %3462 = vmatpush3.bf16.msra.mxu1 %v3461_v3  ;;  %v3980_v11 = vld [vmem:[%s4599_s3 + $0x6] sm:$0x3]  ;;  %s4003_s3 = sld [smem:[#allocation2]]  ;;  %s4015_s21 = sld [smem:[#allocation7 + $0x2]]  ;;  %vm2634_vm2 = vcmask 1041408  }
  0x6f   :  { %3463 = vmatprep.subr.bf16.mxu1 %v4616_v2  ;;  %3474 = vmatpush3.bf16.msra.mxu0 %v3473_v7  ;;  %s4007_s27 = sld [smem:[#allocation2 + $0x10]]  ;;  %s4017_s17 = sld [smem:[#allocation7 + $0x3]] }
  0x70   :  { %3478 = vmatprep.subr.bf16.mxu0 %v4616_v2  ;;  %s4009_s18 = sld [smem:[#allocation2 + $0x18]]  ;;  %s4019_s22 = sld [smem:[#allocation2 + $0x1]] }
  0x71   :  { %3199 = vmatmul.mubr.msk.f32.vlgmr.msra.gmra.mrb[0].mxu1 %vm138_vm1, %v3940_v8  ;;  %s4011_s19 = sld [smem:[#allocation7]]  ;;  %s4021_s23 = sld [smem:[#allocation2 + $0x9]] }
  0x72   :  { %3465 = vmatpush3.bf16.msra.mxu1 %v3461_v3  ;;  %3205 = vmatprep.mubr.msk.f32.mxu1 %vm3771_vm0, %v4618_v4  ;;  %s4023_s24 = sld [smem:[#allocation2 + $0x11]]  ;;  %s4027_s30 = sld [smem:[#allocation2 + $0x2]]  ;;  %v753_v16 = vstv %s4005_s2  ;;  %v750_v20 = vstv %s4013_s20 }
  0x73   :  { %3227 = vmatmul.mubr.msk.f32.vlgmr.msra.gmra.mrb[0].mxu0 %vm138_vm1, %v3940_v8  ;;  %3466 = vmatprep.subr.bf16.mxu1 %v4616_v2  ;;  %s4025_s4 = sld [smem:[#allocation2 + $0x19]]  ;;  %s4029_s8 = sld [smem:[#allocation2 + $0xa]] }
  0x74   :  { %3480 = vmatpush3.bf16.msra.mxu0 %v3473_v7  ;;  %3240 = vmatprep.mubr.msk.f32.mxu0 %vm3771_vm0, %v4618_v4  ;;  %s4031_s29 = sld [smem:[#allocation2 + $0x12]]  ;;  %v715_v15 = vstv %s4003_s3  ;;  %s4039_s1 = sld [smem:[#allocation2 + $0x4]]  ;;  %v788_v21 = vstv %s4015_s21 }
  0x75   :  { %3206 = vmatmul.mubr.msk.f32.vlgmr.msra.gmra.mrb[2].mxu1 %vm138_vm1, %v3951_v9  ;;  %3484 = vmatprep.subr.bf16.mxu0 %v4616_v2  ;;  %s4033_s12 = sld [smem:[#allocation2 + $0x1a]]  ;;  %v791_v17 = vstv %s4007_s27  ;;  %s4041_s26 = sld [smem:[#allocation2 + $0xc]]  ;;  %v826_v22 = vstv %s4017_s17 }
  0x76   :  { %3468 = vmatpush3.bf16.msra.mxu1 %v3461_v3  ;;  %3212 = vmatprep.mubr.msk.f32.mxu1 %vm3771_vm0, %v4618_v4  ;;  %v829_v18 = vstv %s4009_s18  ;;  %s4047_s25 = sld [smem:[#allocation2 + $0x14]]  ;;  %v719_v24 = vstv %s4019_s22  ;;  %s4055_s15 = sld [smem:[#allocation2 + $0x6]] }
  0x77   :  { %3469 = vmatprep.subr.bf16.mxu1 %v4616_v2  ;;  %3241 = vmatmul.mubr.msk.f32.vlgmr.msra.gmra.mrb[2].mxu0 %vm138_vm1, %v3966_v10  ;;  %v712_v19 = vstv %s4011_s19  ;;  %s4049_s28 = sld [smem:[#allocation2 + $0x1c]]  ;;  %v757_v25 = vstv %s4021_s23  ;;  %s4057_s16 = sld [smem:[#allocation2 + $0xe]] }
  0x78   :  { %3254 = vmatprep.mubr.msk.f32.mxu0 %vm3771_vm0, %v4618_v4  ;;  %3486 = vmatpush3.bf16.msra.mxu0 %v3997_v14  ;;  %v795_v26 = vstv %s4023_s24  ;;  %s4059_s0 = sld [smem:[#allocation2 + $0x16]]  ;;  %v723_v34 = vstv %s4027_s30  ;;  %s4067_s2 = sld [smem:[#allocation2 + $0x3]] }
  0x79   :  { %3213 = vmatmul.mubr.msk.f32.vlgmr.msra.gmra.mrb[4].mxu1 %vm138_vm1, %v3966_v10  ;;  %3490 = vmatprep.subr.bf16.mxu0 %v4616_v2  ;;  %v833_v27 = vstv %s4025_s4  ;;  %s4061_s3 = sld [smem:[#allocation2 + $0x1e]]  ;;  %v761_v35 = vstv %s4029_s8  ;;  %s4069_s27 = sld [smem:[#allocation2 + $0xb]] }
  0x7a   :  { %3471 = vmatpush3.bf16.msra.mxu1 %v3461_v3  ;;  %3219 = vmatprep.mubr.msk.f32.mxu1 %vm3771_vm0, %v4618_v4  ;;  %v799_v36 = vstv %s4031_s29  ;;  %s4071_s18 = sld [smem:[#allocation2 + $0x13]]  ;;  %s4075_s20 = sld [smem:[#allocation2 + $0x5]]  ;;  %v731_v1 = vstv %s4039_s1 }
  0x7b   :  { %3475 = vmatprep.subr.bf16.mxu1 %v4616_v2  ;;  %v837_v37 = vstv %s4033_s12  ;;  %s4073_s19 = sld [smem:[#allocation2 + $0x1b]]  ;;  %s4077_s21 = sld [smem:[#allocation2 + $0xd]]  ;;  %v769_v3 = vstv %s4041_s26 }
  0x7c   :  { %s4079_s17 = sld [smem:[#allocation2 + $0x15]]  ;;  %s4083_s23 = sld [smem:[#allocation2 + $0x7]]  ;;  %v807_v5 = vstv %s4047_s25  ;;  %v739_v12 = vstv %s4055_s15 }
  0x7d   :  { %3220 = vmatmul.mubr.msk.f32.vlgmr.msra.gmra.mrb[6].mxu1 %vm138_vm1, %v3980_v11  ;;  %s4081_s22 = sld [smem:[#allocation2 + $0x1d]]  ;;  %s4085_s24 = sld [smem:[#allocation2 + $0xf]]  ;;  %v845_v6 = vstv %s4049_s28  ;;  %v777_v13 = vstv %s4057_s16 }
  0x7e   :  { %3477 = vmatpush3.bf16.msra.mxu1 %v3473_v7  ;;  %3233 = vmatprep.mubr.msk.f32.mxu1 %vm3771_vm0, %v4618_v4  ;;  %s4087_s4 = sld [smem:[#allocation2 + $0x17]]  ;;  %s4189_s8 = sld [smem:[#allocation2 + $0x20]] }
  0x7f   :  { %3481 = vmatprep.subr.bf16.mxu1 %v4616_v2  ;;  %s4089_s30 = sld [smem:[#allocation2 + $0x1f]]  ;;  %s4191_s29 = sld [smem:[#allocation2 + $0x28]] }
  0x80   :  { %s4193_s12 = sld [smem:[#allocation2 + $0x30]]  ;;  %s4197_s26 = sld [smem:[#allocation7 + $0x4]] }
  0x81   :  { %3234 = vmatmul.mubr.msk.f32.vlgmr.msra.gmra.mrb[8].mxu1 %vm138_vm1, %v3951_v9  ;;  %s4195_s1 = sld [smem:[#allocation2 + $0x38]]  ;;  %s4199_s25 = sld [smem:[#allocation7 + $0x5]] }
  0x82   :  { %3483 = vmatpush3.bf16.msra.mxu1 %v3473_v7  ;;  %3247 = vmatprep.mubr.msk.f32.mxu1 %vm3771_vm0, %v4618_v4  ;;  %s4201_s28 = sld [smem:[#allocation7 + $0x6]]  ;;  %s4203_s15 = sld [smem:[#allocation7 + $0x7]] }
  0x83   :  { %3487 = vmatprep.subr.bf16.mxu1 %v4616_v2  ;;  %s4205_s16 = sld [smem:[#allocation2 + $0x22]]  ;;  %s4235_s14 = sld [smem:[#allocation2 + $0x39]] }
  0x84   :  { %s4237_s13 = sld [smem:[#allocation2 + $0x23]]  ;;  %s4245_s7 = sld [smem:[#allocation2 + $0x25]] }
  0x85   :  { %3248 = vmatmul.mubr.msk.f32.vlgmr.msra.gmra.mrb[10].mxu1 %vm138_vm1, %v3980_v11  ;;  %s4239_s11 = sld [smem:[#allocation2 + $0x2b]]  ;;  %s4247_s6 = sld [smem:[#allocation2 + $0x2d]] }
  0x86   :  { %3261 = vmatprep.mubr.msk.f32.mxu1 %vm3771_vm0, %v4618_v4  ;;  %3489 = vmatpush3.bf16.msra.mxu1 %v3997_v14  ;;  %s4241_s10 = sld [smem:[#allocation2 + $0x33]]  ;;  %s4249_s5 = sld [smem:[#allocation2 + $0x35]] }
  0x87   :  { %3493 = vmatprep.subr.bf16.mxu1 %v4616_v2  ;;  %s4243_s9 = sld [smem:[#allocation2 + $0x3b]] }
  0x8b   :  { %4633 = sst [smem:[#allocation22_spill]] %s4239_s11  ;;  %s4257_s11 = sld [smem:[#allocation2 + $0x27]] }
  0x8d   :  { %4634 = sst [smem:[#allocation23_spill]] %s4243_s9  ;;  %s4259_s9 = sld [smem:[#allocation2 + $0x2f]] }
 0x144   :  { %v208_v23 = vpop.f32.mrb[0].mxu1 }
 0x145   :  { %v716_v28 = vmul.f32 %v715_v15, %v208_v23  ;;  %v754_v29 = vmul.f32 %v753_v16, %v208_v23  ;;  %v792_v30 = vmul.f32 %v791_v17, %v208_v23  ;;  %v830_v31 = vmul.f32 %v829_v18, %v208_v23  ;;  %v3200_v32 = vpop.f32.mrb[1].mxu1 }
 0x146   :  { %v497_v33 = vpop.f32.mrb[0].mxu0  ;;  %v815_v15 = vstv %s4059_s0  ;;  %v853_v16 = vstv %s4061_s3  ;;  %v735_v18 = vstv %s4075_s20  ;;  %v765_v23 = vstv %s4069_s27  ;;  %s4207_s0 = sld [smem:[#allocation2 + $0x2a]]  ;;  %s4213_s27 = sld [smem:[#allocation2 + $0x24]] }
 0x147   :  { %v717_v38 = vadd.f32 %v716_v28, %v712_v19  ;;  %v755_v39 = vadd.f32 %v754_v29, %v750_v20  ;;  %v793_v40 = vadd.f32 %v792_v30, %v788_v21  ;;  %v831_v41 = vadd.f32 %v830_v31, %v826_v22  ;;  %v3228_v42 = vpop.f32.mrb[1].mxu0  ;;  %s4209_s3 = sld [smem:[#allocation2 + $0x32]]  ;;  %s4219_s20 = sld [smem:[#allocation2 + $0x3c]] }
 0x148   :  { %v720_v43 = vmul.f32 %v719_v24, %v497_v33  ;;  %v758_v44 = vmul.f32 %v757_v25, %v497_v33  ;;  %v796_v45 = vmul.f32 %v795_v26, %v497_v33  ;;  %v834_v46 = vmul.f32 %v833_v27, %v497_v33  ;;  %v281_v47 = vpop.f32.mrb[2].mxu1 }
 0x149   :  { %v724_v48 = vmul.f32 %v723_v34, %v281_v47  ;;  %v762_v49 = vmul.f32 %v761_v35, %v281_v47  ;;  %v800_v50 = vmul.f32 %v799_v36, %v281_v47  ;;  %v838_v51 = vmul.f32 %v837_v37, %v281_v47  ;;  %v3207_v52 = vpop.f32.mrb[3].mxu1 }
 0x14a   :  { %v721_v53 = vadd.f32 %v720_v43, %v717_v38  ;;  %v759_v54 = vadd.f32 %v758_v44, %v755_v39  ;;  %v797_v55 = vadd.f32 %v796_v45, %v793_v40  ;;  %v835_v56 = vadd.f32 %v834_v46, %v831_v41  ;;  %v637_v57 = vpop.f32.mrb[2].mxu0 }
 0x14b   :  { %v3242_v58 = vpop.f32.mrb[3].mxu0  ;;  %v773_v19 = vstv %s4077_s21  ;;  %v811_v20 = vstv %s4079_s17  ;;  %v849_v21 = vstv %s4081_s22  ;;  %v727_v22 = vstv %s4067_s2  ;;  %s4211_s2 = sld [smem:[#allocation2 + $0x3a]]  ;;  %s4221_s21 = sld [smem:[#allocation2 + $0x26]] }
 0x14c   :  { %v725_v59 = vadd.f32 %v724_v48, %v721_v53  ;;  %v763_v60 = vadd.f32 %v762_v49, %v759_v54  ;;  %v801_v61 = vadd.f32 %v800_v50, %v797_v55  ;;  %v839_v62 = vadd.f32 %v838_v51, %v835_v56  ;;  %v354_v63 = vpop.f32.mrb[4].mxu1  ;;  %s4223_s17 = sld [smem:[#allocation2 + $0x2e]] }
 0x14d   :  { %v3214_v0 = vpop.f32.mrb[5].mxu1  ;;  %v803_v24 = vstv %s4071_s18  ;;  %v841_v25 = vstv %s4073_s19  ;;  %v743_v26 = vstv %s4083_s23  ;;  %v781_v27 = vstv %s4085_s24  ;;  %s4215_s18 = sld [smem:[#allocation2 + $0x2c]]  ;;  %s4225_s22 = sld [smem:[#allocation2 + $0x36]] }
 0x14e   :  { %v819_v28 = vstv %s4087_s4  ;;  %v857_v29 = vstv %s4089_s30  ;;  %v736_v31 = vmul.f32 %v735_v18, %v637_v57  ;;  %v774_v32 = vmul.f32 %v773_v19, %v637_v57  ;;  %s4217_s19 = sld [smem:[#allocation2 + $0x34]]  ;;  %s4227_s23 = sld [smem:[#allocation2 + $0x3e]] }
 0x14f   :  { %v812_v33 = vmul.f32 %v811_v20, %v637_v57  ;;  %v850_v34 = vmul.f32 %v849_v21, %v637_v57  ;;  %v732_v40 = vmul.f32 %v731_v1, %v354_v63  ;;  %v770_v41 = vmul.f32 %v769_v3, %v354_v63  ;;  %s4229_s24 = sld [smem:[#allocation2 + $0x21]] }
 0x150   :  { %v427_v7 = vpop.f32.mrb[6].mxu1  ;;  %v808_v42 = vmul.f32 %v807_v5, %v354_v63  ;;  %v846_v43 = vmul.f32 %v845_v6, %v354_v63  ;;  %s4231_s4 = sld [smem:[#allocation2 + $0x29]] }
 0x151   :  { %v3221_v17 = vpop.f32.mrb[7].mxu1  ;;  %v740_v48 = vmul.f32 %v739_v12, %v427_v7  ;;  %v778_v49 = vmul.f32 %v777_v13, %v427_v7  ;;  %v816_v50 = vmul.f32 %v815_v15, %v427_v7  ;;  %v854_v51 = vmul.f32 %v853_v16, %v427_v7  ;;  %s4233_s30 = sld [smem:[#allocation2 + $0x31]] }
 0x154   :  { %v567_v30 = vpop.f32.mrb[8].mxu1 }
 0x155   :  { %v728_v35 = vmul.f32 %v727_v22, %v567_v30  ;;  %v766_v36 = vmul.f32 %v765_v23, %v567_v30  ;;  %v804_v37 = vmul.f32 %v803_v24, %v567_v30  ;;  %v842_v38 = vmul.f32 %v841_v25, %v567_v30  ;;  %v3235_v39 = vpop.f32.mrb[9].mxu1  ;;  %v867_v23 = vld [vmem:[#allocation8 + $0x30] sm:$0xff]  ;;  %v868_v24 = vld [vmem:[#allocation8 + $0x38] sm:$0xff] }
 0x156   :  { %v1442_v30 = vstv %s4197_s26  ;;  %v1567_v39 = vstv %s4211_s2  ;;  %s4637_s26 = sld [smem:[#allocation23_spill]]  ;;  %s4404_s2 = sld [smem:[#allocation2 + $0x54]] }
 0x157   :  { %v729_v44 = vadd.f32 %v728_v35, %v725_v59  ;;  %v767_v45 = vadd.f32 %v766_v36, %v763_v60  ;;  %v805_v46 = vadd.f32 %v804_v37, %v801_v61  ;;  %v843_v47 = vadd.f32 %v842_v38, %v839_v62  ;;  %4632 = sst [smem:[#allocation21_spill]] %s4233_s30  ;;  %s4251_s30 = sld [smem:[#allocation2 + $0x3d]] }
 0x158   :  { %v707_v52 = vpop.f32.mrb[10].mxu1  ;;  %v1453_v36 = vstv %s4205_s16  ;;  %v1491_v37 = vstv %s4207_s0  ;;  %v1529_v38 = vstv %s4209_s3  ;;  %s4398_s16 = sld [smem:[#allocation2 + $0x5a]]  ;;  %s4400_s0 = sld [smem:[#allocation2 + $0x44]] }
 0x159   :  { %v733_v53 = vadd.f32 %v732_v40, %v729_v44  ;;  %v771_v54 = vadd.f32 %v770_v41, %v767_v45  ;;  %v809_v55 = vadd.f32 %v808_v42, %v805_v46  ;;  %v847_v56 = vadd.f32 %v846_v43, %v843_v47  ;;  %v3249_v57 = vpop.f32.mrb[11].mxu1  ;;  %s4402_s3 = sld [smem:[#allocation2 + $0x4c]] }
 0x15a   :  { %v744_v58 = vmul.f32 %v743_v26, %v707_v52  ;;  %v782_v0 = vmul.f32 %v781_v27, %v707_v52  ;;  %v820_v1 = vmul.f32 %v819_v28, %v707_v52  ;;  %v858_v3 = vmul.f32 %v857_v29, %v707_v52 }
 0x15b   :  { %v737_v5 = vadd.f32 %v736_v31, %v733_v53  ;;  %v775_v63 = vadd.f32 %v774_v32, %v771_v54  ;;  %v813_v59 = vadd.f32 %v812_v33, %v809_v55  ;;  %v851_v60 = vadd.f32 %v850_v34, %v847_v56 }
 0x15c   :  { %v1445_v26 = vstv %s4189_s8  ;;  %v1483_v27 = vstv %s4191_s29  ;;  %v1521_v28 = vstv %s4193_s12  ;;  %v1559_v29 = vstv %s4195_s1  ;;  %s4265_s8 = sld [smem:[#allocation2 + $0x37]]  ;;  %s4635_s12 = sld [smem:[#allocation21_spill]] }
 0x15d   :  { %v741_v61 = vadd.f32 %v740_v48, %v737_v5  ;;  %v779_v62 = vadd.f32 %v778_v49, %v775_v63  ;;  %v817_v6 = vadd.f32 %v816_v50, %v813_v59  ;;  %v855_v12 = vadd.f32 %v854_v51, %v851_v60  ;;  %s4267_s29 = sld [smem:[#allocation2 + $0x3f]]  ;;  %s4636_s1 = sld [smem:[#allocation22_spill]] }
 0x15e   :  { %v1480_v31 = vstv %s4199_s25  ;;  %v1518_v32 = vstv %s4201_s28  ;;  %v1556_v33 = vstv %s4203_s15  ;;  %v1461_v42 = vstv %s4213_s27  ;;  %s4392_s25 = sld [smem:[#allocation2 + $0x42]]  ;;  %s4406_s27 = sld [smem:[#allocation2 + $0x5c]] }
 0x15f   :  { %v4111_v13 = vadd.f32 %v744_v58, %v741_v61  ;;  %v4113_v7 = vadd.f32 %v782_v0, %v779_v62  ;;  %v4115_v15 = vadd.f32 %v820_v1, %v817_v6  ;;  %v4117_v16 = vadd.f32 %v858_v3, %v855_v12  ;;  %s4394_s28 = sld [smem:[#allocation2 + $0x4a]] }
 0x160   :  { %v1499_v43 = vstv %s4215_s18  ;;  %v1537_v44 = vstv %s4217_s19  ;;  %v1575_v45 = vstv %s4219_s20  ;;  %v1469_v46 = vstv %s4221_s21  ;;  %s4396_s15 = sld [smem:[#allocation2 + $0x52]]  ;;  %s4408_s18 = sld [smem:[#allocation2 + $0x46]] }
 0x161   :  { %v4615_v17 = vmax.f32 %v4111_v13, 0.0  ;;  %v4614_v18 = vmax.f32 %v4113_v7, 0.0  ;;  %v4613_v21 = vmax.f32 %v4115_v15, 0.0  ;;  %v4612_v22 = vmax.f32 %v4117_v16, 0.0  ;;  %s4410_s19 = sld [smem:[#allocation2 + $0x4e]] }
 0x162   :  { %v1507_v47 = vstv %s4223_s17  ;;  %v1449_v50 = vstv %s4229_s24  ;;  %v1487_v51 = vstv %s4231_s4  ;;  %v1525_v52 = vstv %s4635_s12  ;;  %s4412_s20 = sld [smem:[#allocation2 + $0x56]]  ;;  %s4416_s17 = sld [smem:[#allocation2 + $0x41]] }
 0x163   :  { %v4124_v19 = vadd.f32 %v4615_v17, %v3940_v8  ;;  %v4129_v20 = vadd.f32 %v3951_v9, %v4614_v18  ;;  %v3497_v8 = vpack.c.bf16 %v868_v24, %v867_v23  ;;  %v4142_v9 = vadd.f32 %v3966_v10, %v4613_v21  ;;  %v1594_v10 = vld [vmem:[#allocation8 + $0x40] sm:$0xff]  ;;  %s4414_s21 = sld [smem:[#allocation2 + $0x5e]]  ;;  %s4422_s24 = sld [smem:[#allocation2 + $0x59]] }
 0x164   :  { %v4147_v25 = vadd.f32 %v3980_v11, %v4612_v22  ;;  %v1595_v11 = vld [vmem:[#allocation8 + $0x48] sm:$0xff]  ;;  %v1563_v53 = vstv %s4235_s14  ;;  %v1457_v5 = vstv %s4237_s13  ;;  %v1495_v63 = vstv %s4636_s1  ;;  %s4388_s13 = sld [smem:[#allocation7 + $0xa]]  ;;  %s4390_s14 = sld [smem:[#allocation7 + $0xb]] }
 0x165   :  { %3255 = vmatmul.mubr.msk.f32.vlgmr.msra.gmra.mrb[4].mxu0 %vm138_vm1, %v4124_v19  ;;  %3262 = vmatmul.mubr.msk.f32.vlgmr.msra.gmra.mrb[12].mxu1 %vm138_vm1, %v4129_v20  ;;  %v1533_v59 = vstv %s4241_s10  ;;  %v1571_v60 = vstv %s4637_s26  ;;  %v1465_v61 = vstv %s4245_s7  ;;  %v1503_v62 = vstv %s4247_s6  ;;  %s4378_s6 = sld [smem:[#allocation2 + $0x48]]  ;;  %s4424_s4 = sld [smem:[#allocation2 + $0x43]] }
 0x166   :  { %3492 = vmatpush3.bf16.msra.mxu0 %v3997_v14  ;;  %3495 = vmatpush3.bf16.msra.mxu1 %v3997_v14  ;;  %v4183_v14 = vpack.c.bf16 %v1595_v11, %v1594_v10  ;;  %v1541_v6 = vstv %s4249_s5  ;;  %v1579_v12 = vstv %s4251_s30  ;;  %v1473_v23 = vstv %s4257_s11  ;;  %s4376_s5 = sld [smem:[#allocation2 + $0x40]]  ;;  %s4386_s11 = sld [smem:[#allocation7 + $0x9]] }
 0x167   :  { %3268 = vmatprep.mubr.msk.f32.mxu0 %vm3771_vm0, %v4618_v4  ;;  %3275 = vmatprep.mubr.msk.f32.mxu1 %vm3771_vm0, %v4618_v4  ;;  %v1511_v24 = vstv %s4259_s9  ;;  %v1587_v10 = vstv %s4267_s29  ;;  %s4380_s7 = sld [smem:[#allocation2 + $0x50]]  ;;  %s4426_s30 = sld [smem:[#allocation2 + $0x4b]] }
 0x168   :  { %3496 = vmatprep.subr.bf16.mxu0 %v4616_v2  ;;  %3499 = vmatprep.subr.bf16.mxu1 %v4616_v2  ;;  %s4382_s9 = sld [smem:[#allocation2 + $0x58]]  ;;  %s4430_s29 = sld [smem:[#allocation2 + $0x5b]] }
 0x169   :  { %3269 = vmatmul.mubr.msk.f32.vlgmr.msra.gmra.mrb[6].mxu0 %vm138_vm1, %v4142_v9  ;;  %3276 = vmatmul.mubr.msk.f32.vlgmr.msra.gmra.mrb[14].mxu1 %vm138_vm1, %v4147_v25  ;;  %s4384_s10 = sld [smem:[#allocation7 + $0x8]]  ;;  %s4432_s12 = sld [smem:[#allocation2 + $0x45]] }
 0x16a   :  { %3498 = vmatpush3.bf16.msra.mxu0 %v3497_v8  ;;  %3501 = vmatpush3.bf16.msra.mxu1 %v3497_v8  ;;  %s4434_s1 = sld [smem:[#allocation2 + $0x4d]] }
 0x16b   :  { %3282 = vmatprep.mubr.msk.f32.mxu0 %vm3771_vm0, %v4618_v4  ;;  %3289 = vmatprep.mubr.msk.f32.mxu1 %vm3771_vm0, %v4618_v4  ;;  %s4436_s26 = sld [smem:[#allocation2 + $0x55]] }
 0x16c   :  { %3502 = vmatprep.subr.bf16.mxu0 %v4616_v2  ;;  %3505 = vmatprep.subr.bf16.mxu1 %v4616_v2 }
 0x16d   :  { %3283 = vmatmul.mubr.msk.f32.vlgmr.msra.gmra.mrb[8].mxu0 %vm138_vm1, %v4124_v19  ;;  %3290 = vmatmul.mubr.msk.f32.vlgmr.msra.gmra.mrb[16].mxu1 %vm138_vm1, %v4129_v20  ;;  %4643 = sst [smem:[#allocation22_spill]] %s4426_s30  ;;  %s4444_s30 = sld [smem:[#allocation2 + $0x47]] }
 0x16e   :  { %3504 = vmatpush3.bf16.msra.mxu0 %v3497_v8  ;;  %3507 = vmatpush3.bf16.msra.mxu1 %v3497_v8  ;;  %v1549_v8 = vstv %s4265_s8  ;;  %s4428_s8 = sld [smem:[#allocation2 + $0x53]]  ;;  %4644 = sst [smem:[#allocation23_spill]] %s4430_s29 }
 0x16f   :  { %3296 = vmatprep.mubr.msk.f32.mxu0 %vm3771_vm0, %v4618_v4  ;;  %3303 = vmatprep.mubr.msk.f32.mxu1 %vm3771_vm0, %v4618_v4  ;;  %s4446_s29 = sld [smem:[#allocation2 + $0x4f]] }
 0x170   :  { %3508 = vmatprep.subr.bf16.mxu0 %v4616_v2  ;;  %3511 = vmatprep.subr.bf16.mxu1 %v4616_v2 }
 0x171   :  { %3297 = vmatmul.mubr.msk.f32.vlgmr.msra.gmra.mrb[10].mxu0 %vm138_vm1, %v4142_v9  ;;  %3304 = vmatmul.mubr.msk.f32.vlgmr.msra.gmra.mrb[18].mxu1 %vm138_vm1, %v4147_v25 }
 0x172   :  { %3310 = vmatprep.mubr.msk.f32.mxu0 %vm3771_vm0, %v4618_v4  ;;  %3317 = vmatprep.mubr.msk.f32.mxu1 %vm3771_vm0, %v4618_v4 }
 0x173   :  { %3510 = vmatpush3.bf16.msra.mxu0 %v4183_v14  ;;  %3513 = vmatpush3.bf16.msra.mxu1 %v4183_v14 }
 0x174   :  { %3514 = vmatprep.subr.bf16.mxu0 %v4616_v2  ;;  %3517 = vmatprep.subr.bf16.mxu1 %v4616_v2 }
 0x238   :  { %v938_v34 = vpop.f32.mrb[4].mxu0  ;;  %v1011_v35 = vpop.f32.mrb[12].mxu1 }
 0x239   :  { %v3256_v40 = vpop.f32.mrb[5].mxu0  ;;  %v3263_v41 = vpop.f32.mrb[13].mxu1  ;;  %v1446_v54 = vmul.f32 %v1445_v26, %v938_v34  ;;  %v1484_v55 = vmul.f32 %v1483_v27, %v938_v34  ;;  %v1522_v56 = vmul.f32 %v1521_v28, %v938_v34  ;;  %v1560_v57 = vmul.f32 %v1559_v29, %v938_v34 }
 0x23a   :  { %v1454_v18 = vmul.f32 %v1453_v36, %v1011_v35  ;;  %v1492_v17 = vmul.f32 %v1491_v37, %v1011_v35  ;;  %v1530_v2 = vmul.f32 %v1529_v38, %v1011_v35  ;;  %v1568_v4 = vmul.f32 %v1567_v39, %v1011_v35 }
 0x23b   :  { %v1447_v11 = vadd.f32 %v1446_v54, %v1442_v30  ;;  %v1485_v26 = vadd.f32 %v1484_v55, %v1480_v31  ;;  %v1523_v27 = vadd.f32 %v1522_v56, %v1518_v32  ;;  %v1561_v28 = vadd.f32 %v1560_v57, %v1556_v33 }
 0x23c   :  { %v1084_v58 = vpop.f32.mrb[6].mxu0  ;;  %v4285_v0 = vpop.f32.mrb[14].mxu1 }
 0x23d   :  { %v3270_v1 = vpop.f32.mrb[7].mxu0  ;;  %v3277_v3 = vpop.f32.mrb[15].mxu1  ;;  %v1462_v39 = vmul.f32 %v1461_v42, %v1084_v58  ;;  %v1500_v54 = vmul.f32 %v1499_v43, %v1084_v58  ;;  %v1538_v55 = vmul.f32 %v1537_v44, %v1084_v58  ;;  %v1576_v56 = vmul.f32 %v1575_v45, %v1084_v58 }
 0x23e   :  { %v1470_v43 = vmul.f32 %v1469_v46, %v4285_v0  ;;  %v1508_v44 = vmul.f32 %v1507_v47, %v4285_v0  ;;  %v4638_v45 = vstv %s4225_s22  ;;  %s4418_s22 = sld [smem:[#allocation2 + $0x49]] }
 0x23f   :  { %v1546_v58 = vmul.f32 %v4638_v45, %v4285_v0  ;;  %v2179_v45 = vstv %s4416_s17 }
 0x240   :  { %v1227_v29 = vpop.f32.mrb[8].mxu0  ;;  %v1297_v34 = vpop.f32.mrb[16].mxu1 }
 0x241   :  { %v1450_v40 = vmul.f32 %v1449_v50, %v1227_v29  ;;  %v1488_v41 = vmul.f32 %v1487_v51, %v1227_v29  ;;  %v1526_v1 = vmul.f32 %v1525_v52, %v1227_v29  ;;  %v1564_v3 = vmul.f32 %v1563_v53, %v1227_v29  ;;  %v3284_v22 = vpop.f32.mrb[9].mxu0  ;;  %v3291_v21 = vpop.f32.mrb[17].mxu1 }
 0x242   :  { %v1458_v32 = vmul.f32 %v1457_v5, %v1297_v34  ;;  %v1496_v33 = vmul.f32 %v1495_v63, %v1297_v34  ;;  %v1534_v50 = vmul.f32 %v1533_v59, %v1297_v34  ;;  %v1572_v51 = vmul.f32 %v1571_v60, %v1297_v34 }
 0x243   :  { %v1451_v49 = vadd.f32 %v1450_v40, %v1447_v11  ;;  %v1489_v48 = vadd.f32 %v1488_v41, %v1485_v26  ;;  %v1527_v30 = vadd.f32 %v1526_v1, %v1523_v27  ;;  %v1565_v31 = vadd.f32 %v1564_v3, %v1561_v28 }
 0x244   :  { %v1367_v52 = vpop.f32.mrb[10].mxu0  ;;  %v1437_v53 = vpop.f32.mrb[18].mxu1  ;;  %v4639_v11 = vstv %s4227_s23  ;;  %s4420_s23 = sld [smem:[#allocation2 + $0x51]] }
 0x245   :  { %v1455_v22 = vadd.f32 %v1454_v18, %v1451_v49  ;;  %v1493_v21 = vadd.f32 %v1492_v17, %v1489_v48  ;;  %v1531_v36 = vadd.f32 %v1530_v2, %v1527_v30  ;;  %v1569_v37 = vadd.f32 %v1568_v4, %v1565_v31  ;;  %v3298_v38 = vpop.f32.mrb[11].mxu0  ;;  %v3305_v35 = vpop.f32.mrb[19].mxu1 }
 0x246   :  { %v1466_v2 = vmul.f32 %v1465_v61, %v1367_v52  ;;  %v1504_v4 = vmul.f32 %v1503_v62, %v1367_v52  ;;  %v1542_v48 = vmul.f32 %v1541_v6, %v1367_v52  ;;  %v1580_v49 = vmul.f32 %v1579_v12, %v1367_v52 }
 0x247   :  { %v1459_v57 = vadd.f32 %v1458_v32, %v1455_v22  ;;  %v1497_v5 = vadd.f32 %v1496_v33, %v1493_v21  ;;  %v1535_v18 = vadd.f32 %v1534_v50, %v1531_v36  ;;  %v1573_v17 = vadd.f32 %v1572_v51, %v1569_v37  ;;  %v1597_v33 = vld [vmem:[#allocation8 + $0x50] sm:$0xff]  ;;  %v1598_v50 = vld [vmem:[#allocation8 + $0x58] sm:$0xff] }
 0x248   :  { %v1584_v26 = vmul.f32 %v4639_v11, %v4285_v0  ;;  %v1474_v27 = vmul.f32 %v1473_v23, %v1437_v53  ;;  %v1512_v28 = vmul.f32 %v1511_v24, %v1437_v53  ;;  %v1550_v29 = vmul.f32 %v1549_v8, %v1437_v53 }
 0x249   :  { %v1463_v63 = vadd.f32 %v1462_v39, %v1459_v57  ;;  %v1501_v42 = vadd.f32 %v1500_v54, %v1497_v5  ;;  %v1539_v59 = vadd.f32 %v1538_v55, %v1535_v18  ;;  %v1577_v60 = vadd.f32 %v1576_v56, %v1573_v17 }
 0x24a   :  { %v1588_v34 = vmul.f32 %v1587_v10, %v1437_v53  ;;  %v3521_v51 = vpack.c.bf16 %v1598_v50, %v1597_v33  ;;  %v4640_v52 = vmov 0.0   ;;  %v4641_v53 = vmov 0.0|0.0   ;;  %4642 = sst [smem:[#allocation21_spill]] %s4420_s23  ;;  %s4438_s23 = sld [smem:[#allocation2 + $0x5d]] }
 0x24b   :  { %v1467_v61 = vadd.f32 %v1466_v2, %v1463_v63  ;;  %v1505_v62 = vadd.f32 %v1504_v4, %v1501_v42  ;;  %v1543_v6 = vadd.f32 %v1542_v48, %v1539_v59  ;;  %v1581_v12 = vadd.f32 %v1580_v49, %v1577_v60 }
 0x24c   :  { %v2175_v22 = vstv %s4376_s5  ;;  %v2212_v21 = vstv %s4378_s6  ;;  %v2249_v36 = vstv %s4380_s7  ;;  %v2286_v37 = vstv %s4382_s9  ;;  %s4452_s5 = sld [smem:[#allocation2 + $0x57]]  ;;  %s4645_s7 = sld [smem:[#allocation21_spill]] }
 0x24d   :  { %v1471_v40 = vadd.f32 %v1470_v43, %v1467_v61  ;;  %v1509_v41 = vadd.f32 %v1508_v44, %v1505_v62  ;;  %v1547_v46 = vadd.f32 %v1546_v58, %v1543_v6  ;;  %v1585_v1 = vadd.f32 %v1584_v26, %v1581_v12  ;;  %s4454_s6 = sld [smem:[#allocation2 + $0x5f]]  ;;  %s4646_s9 = sld [smem:[#allocation22_spill]] }
 0x24e   :  { %v2172_v38 = vstv %s4384_s10  ;;  %v2209_v35 = vstv %s4386_s11  ;;  %v2246_v39 = vstv %s4388_s13  ;;  %v2283_v54 = vstv %s4390_s14  ;;  %s4647_s10 = sld [smem:[#allocation23_spill]]  ;;  %s4659_s14 = sld [smem:[#allocation24_spill]] }
 0x24f   :  { %v4319_v3 = vadd.f32 %v1474_v27, %v1471_v40  ;;  %v4321_v47 = vadd.f32 %v1512_v28, %v1509_v41  ;;  %v4323_v30 = vadd.f32 %v1550_v29, %v1547_v46  ;;  %v4325_v31 = vadd.f32 %v1588_v34, %v1585_v1 }
 0x250   :  { %v2183_v57 = vstv %s4392_s25  ;;  %v2220_v5 = vstv %s4394_s28  ;;  %v2257_v18 = vstv %s4396_s15  ;;  %v2294_v17 = vstv %s4398_s16  ;;  %s4660_s15 = sld [smem:[#allocation25_spill]] }
 0x251   :  { %v4623_v0 = vmax.f32 %v4319_v3, 0.0  ;;  %v4622_v32 = vmax.f32 %v4321_v47, 0.0  ;;  %v4621_v8 = vmax.f32 %v4323_v30, 0.0  ;;  %v4620_v10 = vmax.f32 %v4325_v31, 0.0 }
 0x252   :  { %v2191_v48 = vstv %s4400_s0  ;;  %v2228_v49 = vstv %s4402_s3  ;;  %v2265_v63 = vstv %s4404_s2  ;;  %v2302_v42 = vstv %s4406_s27  ;;  %s4661_s3 = sld [smem:[#allocation26_spill]] }
 0x253   :  { %v1478_v23 = vadd.f32 %v4623_v0, %v4124_v19  ;;  %v1516_v24 = vadd.f32 %v4622_v32, %v4129_v20  ;;  %v1554_v19 = vadd.f32 %v4621_v8, %v4142_v9  ;;  %v1592_v20 = vadd.f32 %v4620_v10, %v4147_v25  ;;  %v2322_v9 = vld [vmem:[#allocation9 + $0x10] sm:$0xff]  ;;  %v2323_v25 = vld [vmem:[#allocation9 + $0x18] sm:$0xff] }
 0x254   :  { %v2199_v59 = vstv %s4408_s18  ;;  %v2216_v58 = vstv %s4418_s22  ;;  %v2253_v11 = vstv %s4645_s7  ;;  %v2290_v26 = vstv %s4422_s24  ;;  %s4662_s18 = sld [smem:[#allocation27_spill]] }
 0x255   :  { %3311 = vmatmul.mubr.msk.f32.vlgmr.msra.gmra.mrb[12].mxu0 %vm138_vm1, %v1478_v23  ;;  %3318 = vmatmul.mubr.msk.f32.vlgmr.msra.gmra.mrb[20].mxu1 %vm138_vm1, %v1516_v24  ;;  %v2187_v40 = vstv %s4424_s4  ;;  %v2224_v41 = vstv %s4646_s9  ;;  %v2261_v46 = vstv %s4428_s8  ;;  %v2298_v1 = vstv %s4647_s10  ;;  %s3773_s8 = smov [#allocation14]  }
 0x256   :  { %3516 = vmatpush3.bf16.msra.mxu0 %v4183_v14  ;;  %3519 = vmatpush3.bf16.msra.mxu1 %v4183_v14  ;;  %v3533_v14 = vpack.c.bf16 %v2323_v25, %v2322_v9  ;;  %v2269_v33 = vstv %s4436_s26  ;;  %v2306_v50 = vstv %s4438_s23  ;;  %v2314_v9 = vstv %s4454_s6  ;;  %s4664_s23 = sld [smem:[#allocation29_spill]] }
 0x257   :  { %3324 = vmatprep.mubr.msk.f32.mxu0 %vm3771_vm0, %v4640_v52  ;;  %3331 = vmatprep.mubr.msk.f32.mxu1 %vm3771_vm0, %v4640_v52 }
 0x258   :  { %3520 = vmatprep.subr.bf16.mxu0 %v4641_v53  ;;  %3523 = vmatprep.subr.bf16.mxu1 %v4641_v53 }
 0x259   :  { %3325 = vmatmul.mubr.msk.f32.vlgmr.msra.gmra.mrb[14].mxu0 %vm138_vm1, %v1554_v19  ;;  %3332 = vmatmul.mubr.msk.f32.vlgmr.msra.gmra.mrb[22].mxu1 %vm138_vm1, %v1592_v20 }
 0x25a   :  { %3522 = vmatpush3.bf16.msra.mxu0 %v3521_v51  ;;  %3525 = vmatpush3.bf16.msra.mxu1 %v3521_v51 }
 0x25b   :  { %3338 = vmatprep.mubr.msk.f32.mxu0 %vm3771_vm0, %v4640_v52  ;;  %3345 = vmatprep.mubr.msk.f32.mxu1 %vm3771_vm0, %v4640_v52 }
 0x25c   :  { %3526 = vmatprep.subr.bf16.mxu0 %v4641_v53  ;;  %3529 = vmatprep.subr.bf16.mxu1 %v4641_v53 }
 0x25d   :  { %3339 = vmatmul.mubr.msk.f32.vlgmr.msra.gmra.mrb[16].mxu0 %vm138_vm1, %v1478_v23  ;;  %3346 = vmatmul.mubr.msk.f32.vlgmr.msra.gmra.mrb[24].mxu1 %vm138_vm1, %v1516_v24  ;;  %v2195_v23 = vstv %s4432_s12  ;;  %v2232_v24 = vstv %s4434_s1 }
 0x25e   :  { %3528 = vmatpush3.bf16.msra.mxu0 %v3521_v51  ;;  %3531 = vmatpush3.bf16.msra.mxu1 %v3521_v51  ;;  %v2203_v51 = vstv %s4444_s30  ;;  %s4665_s30 = sld [smem:[#allocation30_spill]] }
 0x25f   :  { %3352 = vmatprep.mubr.msk.f32.mxu0 %vm3771_vm0, %v4640_v52  ;;  %3359 = vmatprep.mubr.msk.f32.mxu1 %vm3771_vm0, %v4640_v52 }
 0x260   :  { %3532 = vmatprep.subr.bf16.mxu0 %v4641_v53  ;;  %3544 = vmatprep.subr.bf16.mxu1 %v4641_v53 }
 0x261   :  { %3353 = vmatmul.mubr.msk.f32.vlgmr.msra.gmra.mrb[18].mxu0 %vm138_vm1, %v1554_v19  ;;  %3360 = vmatmul.mubr.msk.f32.vlgmr.msra.gmra.mrb[26].mxu1 %vm138_vm1, %v1592_v20  ;;  %v2240_v19 = vstv %s4446_s29  ;;  %v2277_v20 = vstv %s4452_s5  ;;  %s2923_s29 = sshll.u32 %s3773_s8, 4  ;;  %s2924_s29 = int_to_ptr.vmem [resolvable:$true] %s2923_s29 }
 0x262   :  { %3366 = vmatprep.mubr.msk.f32.mxu0 %vm3771_vm0, %v4640_v52  ;;  %3422 = vmatprep.mubr.msk.f32.mxu1 %vm3771_vm0, %v4640_v52  ;;  %s3728_s12 = scalar_lea.vmem %s2924_s29, 32  ;;  %p3733_p13 = scmp.lt.s32.totalorder %s2924_s29, %s2924_s29 }
 0x263   :  { %3534 = vmatpush3.bf16.msra.mxu0 %v3533_v14  ;;  %p3729_p12 = scmp.ne.s32.totalorder %s2924_s29, %s3728_s12  ;;  %p3734_p0 = scmp.lt.s32.totalorder %s3728_s12, %s3728_s12 }
 0x264   :  { %3535 = vmatprep.subr.bf16.mxu0 %v4641_v53 }
 0x265   :  { %p3735_p1 = por %p3734_p0, %p3733_p13 }
 0x267   :  { %p3736_p2 = pnand %p3735_p1, %p3729_p12 }
 0x328   :  { %v1668_v55 = vpop.f32.mrb[12].mxu0  ;;  %v1741_v56 = vpop.f32.mrb[20].mxu1 }
 0x329   :  { %v3312_v2 = vpop.f32.mrb[13].mxu0  ;;  %v3319_v4 = vpop.f32.mrb[21].mxu1  ;;  %v2176_v61 = vmul.f32 %v2175_v22, %v1668_v55  ;;  %v2213_v62 = vmul.f32 %v2212_v21, %v1668_v55  ;;  %v2250_v6 = vmul.f32 %v2249_v36, %v1668_v55  ;;  %v2287_v12 = vmul.f32 %v2286_v37, %v1668_v55 }
 0x32a   :  { %v2184_v8 = vmul.f32 %v2183_v57, %v1741_v56  ;;  %v2221_v32 = vmul.f32 %v2220_v5, %v1741_v56  ;;  %v2258_v0 = vmul.f32 %v2257_v18, %v1741_v56  ;;  %v2295_v44 = vmul.f32 %v2294_v17, %v1741_v56 }
 0x32b   :  { %v2177_v25 = vadd.f32 %v2176_v61, %v2172_v38  ;;  %v2214_v14 = vadd.f32 %v2213_v62, %v2209_v35  ;;  %v2251_v22 = vadd.f32 %v2250_v6, %v2246_v39  ;;  %v2288_v21 = vadd.f32 %v2287_v12, %v2283_v54 }
 0x32c   :  { %v1814_v27 = vpop.f32.mrb[14].mxu0  ;;  %v4472_v28 = vpop.f32.mrb[22].mxu1 }
 0x32d   :  { %v3326_v29 = vpop.f32.mrb[15].mxu0  ;;  %v3333_v34 = vpop.f32.mrb[23].mxu1  ;;  %v2192_v17 = vmul.f32 %v2191_v48, %v1814_v27  ;;  %v2229_v62 = vmul.f32 %v2228_v49, %v1814_v27  ;;  %v2266_v6 = vmul.f32 %v2265_v63, %v1814_v27  ;;  %v2303_v12 = vmul.f32 %v2302_v42, %v1814_v27 }
 0x32e   :  { %v2200_v49 = vmul.f32 %v2199_v59, %v4472_v28  ;;  %v4648_v63 = vstv %s4410_s19  ;;  %v4649_v42 = vstv %s4412_s20 }
 0x32f   :  { %v2274_v27 = vmul.f32 %v4649_v42, %v4472_v28 }
 0x330   :  { %v1957_v36 = vpop.f32.mrb[16].mxu0  ;;  %v2027_v37 = vpop.f32.mrb[24].mxu1 }
 0x331   :  { %v2180_v55 = vmul.f32 %v2179_v45, %v1957_v36  ;;  %v2217_v2 = vmul.f32 %v2216_v58, %v1957_v36  ;;  %v2254_v4 = vmul.f32 %v2253_v11, %v1957_v36  ;;  %v2291_v29 = vmul.f32 %v2290_v26, %v1957_v36  ;;  %v3340_v34 = vpop.f32.mrb[17].mxu0  ;;  %v3347_v10 = vpop.f32.mrb[25].mxu1 }
 0x332   :  { %v2188_v39 = vmul.f32 %v2187_v40, %v2027_v37  ;;  %v2225_v54 = vmul.f32 %v2224_v41, %v2027_v37  ;;  %v2262_v45 = vmul.f32 %v2261_v46, %v2027_v37  ;;  %v2299_v58 = vmul.f32 %v2298_v1, %v2027_v37 }
 0x333   :  { %v2181_v43 = vadd.f32 %v2180_v55, %v2177_v25  ;;  %v2218_v60 = vadd.f32 %v2217_v2, %v2214_v14  ;;  %v2255_v38 = vadd.f32 %v2254_v4, %v2251_v22  ;;  %v2292_v35 = vadd.f32 %v2291_v29, %v2288_v21 }
 0x334   :  { %v2097_v11 = vpop.f32.mrb[18].mxu0  ;;  %v2167_v26 = vpop.f32.mrb[26].mxu1  ;;  %v2237_v14 = vmul.f32 %v4648_v63, %v4472_v28  ;;  %v4650_v22 = vstv %s4414_s21  ;;  %v2685_v63 = vld [vmem:[#allocation11 + $0x40] sm:$0xff]  ;;  %s4663_s21 = sld [smem:[#allocation28_spill]] }
 0x335   :  { %v2185_v61 = vadd.f32 %v2184_v8, %v2181_v43  ;;  %v2222_v10 = vadd.f32 %v2221_v32, %v2218_v60  ;;  %v2259_v57 = vadd.f32 %v2258_v0, %v2255_v38  ;;  %v2296_v5 = vadd.f32 %v2295_v44, %v2292_v35  ;;  %v3354_v18 = vpop.f32.mrb[19].mxu0  ;;  %v3361_v56 = vpop.f32.mrb[27].mxu1 }
 0x336   :  { %v2196_v0 = vmul.f32 %v2195_v23, %v2097_v11  ;;  %v2233_v60 = vmul.f32 %v2232_v24, %v2097_v11  ;;  %v2270_v43 = vmul.f32 %v2269_v33, %v2097_v11  ;;  %v2307_v44 = vmul.f32 %v2306_v50, %v2097_v11 }
 0x337   :  { %v2189_v40 = vadd.f32 %v2188_v39, %v2185_v61  ;;  %v2226_v41 = vadd.f32 %v2225_v54, %v2222_v10  ;;  %v2263_v8 = vadd.f32 %v2262_v45, %v2259_v57  ;;  %v2300_v32 = vadd.f32 %v2299_v58, %v2296_v5  ;;  %v2319_v45 = vld [vmem:[#allocation9] sm:$0xff]  ;;  %v2320_v58 = vld [vmem:[#allocation9 + $0x8] sm:$0xff] }
 0x338   :  { %v2311_v21 = vmul.f32 %v4650_v22, %v4472_v28  ;;  %v2204_v36 = vmul.f32 %v2203_v51, %v2167_v26  ;;  %v2241_v37 = vmul.f32 %v2240_v19, %v2167_v26  ;;  %v2278_v55 = vmul.f32 %v2277_v20, %v2167_v26  ;;  %v2688_v22 = vld [vmem:[#allocation11 + $0x58] sm:$0xff] }
 0x339   :  { %v2193_v46 = vadd.f32 %v2192_v17, %v2189_v40  ;;  %v2230_v48 = vadd.f32 %v2229_v62, %v2226_v41  ;;  %v2267_v1 = vadd.f32 %v2266_v6, %v2263_v8  ;;  %v2304_v25 = vadd.f32 %v2303_v12, %v2300_v32  ;;  %v2549_v40 = vld [vmem:[#allocation9 + $0x38] sm:$0xff]  ;;  %v2677_v8 = vld [vmem:[#allocation11] sm:$0xff]  ;;  %v2678_v32 = vld [vmem:[#allocation11 + $0x8] sm:$0xff] }
 0x33a   :  { %v2315_v2 = vmul.f32 %v2314_v9, %v2167_v26  ;;  %v4651_v28 = vmax.f32 %v4111_v13, 0.0  ;;  %v4652_v11 = vmax.f32 %v4319_v3, 0.0  ;;  %v4653_v51 = vmax.f32 %v4113_v7, 0.0 }
 0x33b   :  { %v2197_v23 = vadd.f32 %v2196_v0, %v2193_v46  ;;  %v2234_v24 = vadd.f32 %v2233_v60, %v2230_v48  ;;  %v2271_v33 = vadd.f32 %v2270_v43, %v2267_v1  ;;  %v2308_v50 = vadd.f32 %v2307_v44, %v2304_v25  ;;  %v2679_v60 = vld [vmem:[#allocation11 + $0x10] sm:$0xff]  ;;  %v2680_v43 = vld [vmem:[#allocation11 + $0x18] sm:$0xff]  ;;  %v2681_v46 = vld [vmem:[#allocation11 + $0x20] sm:$0xff] }
 0x33c   :  { %v1477_v61 = vadd.f32 %v4652_v11, %v4651_v28  ;;  %v4654_v19 = vmax.f32 %v4321_v47, 0.0  ;;  %v4655_v9 = vmax.f32 %v4115_v15, 0.0  ;;  %v4656_v26 = vmax.f32 %v4323_v30, 0.0  ;;  %v2471_v15 = vld [vmem:[#allocation9 + $0x20] sm:$0xff]  ;;  %v2682_v48 = vld [vmem:[#allocation11 + $0x28] sm:$0xff]  ;;  %v2683_v25 = vld [vmem:[#allocation11 + $0x30] sm:$0xff] }
 0x33d   :  { %v2201_v4 = vadd.f32 %v2200_v49, %v2197_v23  ;;  %v2238_v29 = vadd.f32 %v2237_v14, %v2234_v24  ;;  %v2275_v59 = vadd.f32 %v2274_v27, %v2271_v33  ;;  %v2312_v34 = vadd.f32 %v2311_v21, %v2308_v50  ;;  %v2686_v14 = vld [vmem:[#allocation11 + $0x48] sm:$0xff]  ;;  %v2687_v27 = vld [vmem:[#allocation11 + $0x50] sm:$0xff]  ;;  %v2689_v23 = vld [vmem:[#allocation11 + $0x60] sm:$0xff] }
 0x33e   :  { %v1515_v20 = vadd.f32 %v4654_v19, %v4653_v51  ;;  %v1553_v10 = vadd.f32 %v4656_v26, %v4655_v9  ;;  %v4657_v57 = vmax.f32 %v4117_v16, 0.0  ;;  %v4658_v5 = vmax.f32 %v4325_v31, 0.0  ;;  %v2472_v16 = vld [vmem:[#allocation9 + $0x28] sm:$0xff]  ;;  %v2548_v31 = vld [vmem:[#allocation9 + $0x30] sm:$0xff] }
 0x33f   :  { %v2205_v38 = vadd.f32 %v2204_v36, %v2201_v4  ;;  %v2242_v35 = vadd.f32 %v2241_v37, %v2238_v29  ;;  %v2279_v39 = vadd.f32 %v2278_v55, %v2275_v59  ;;  %v2316_v54 = vadd.f32 %v2315_v2, %v2312_v34  ;;  %v2690_v24 = vld [vmem:[#allocation11 + $0x68] sm:$0xff]  ;;  %v2691_v50 = vld [vmem:[#allocation11 + $0x70] sm:$0xff]  ;;  %v2692_v36 = vld [vmem:[#allocation11 + $0x78] sm:$0xff] }
 0x340   :  { %v1591_v18 = vadd.f32 %v4658_v5, %v4657_v57  ;;  %v3536_v62 = vpack.c.bf16 %v2320_v58, %v2319_v45  ;;  %v3539_v30 = vpack.c.bf16 %v2472_v16, %v2471_v15  ;;  %v3542_v41 = vpack.c.bf16 %v2549_v40, %v2548_v31  ;;  %v3073_v2 = vld [vmem:[%s4659_s14] ss:$0 sm:$0xff] }
 0x341   :  { %v2206_v56 = vmax.f32 %v2205_v38, 0.0  ;;  %v2243_v13 = vmax.f32 %v2242_v35, 0.0  ;;  %v2280_v17 = vmax.f32 %v2279_v39, 0.0  ;;  %v2317_v3 = vmax.f32 %v2316_v54, 0.0  ;;  %v2667_v15 = vld [vmem:[%s4661_s3] sm:$0x1] }
 0x342   :  { %v3545_v0 = vpack.c.bf16 %v2678_v32, %v2677_v8  ;;  %v3548_v44 = vpack.c.bf16 %v2680_v43, %v2679_v60  ;;  %v3551_v1 = vpack.c.bf16 %v2682_v48, %v2681_v46  ;;  %v3557_v42 = vpack.c.bf16 %v2686_v14, %v2685_v63  ;;  %v2812_v32 = vld [vmem:[#allocation12] sm:$0xff]  ;;  %v2814_v43 = vld [vmem:[#allocation12 + $0x10] sm:$0xff] }
 0x343   :  { %v2207_v6 = vadd.f32 %v2206_v56, %v1477_v61  ;;  %v2244_v7 = vadd.f32 %v2243_v13, %v1515_v20  ;;  %v2281_v12 = vadd.f32 %v2280_v17, %v1553_v10  ;;  %v2318_v47 = vadd.f32 %v2317_v3, %v1591_v18  ;;  %v2816_v48 = vld [vmem:[#allocation12 + $0x20] sm:$0xff] }
 0x344   :  { %3546 = vmatpush3.bf16.msra.mxu1 %v3545_v0  ;;  %v3560_v21 = vpack.c.bf16 %v2688_v22, %v2687_v27  ;;  %v3563_v33 = vpack.c.bf16 %v2690_v24, %v2689_v23  ;;  %v3566_v37 = vpack.c.bf16 %v2692_v36, %v2691_v50  ;;  %v2661_v3 = vlaneseq  ;;  %v2813_v0 = vld [vmem:[#allocation12 + $0x8] sm:$0xff]  ;;  %v2820_v14 = vld [vmem:[#allocation12 + $0x40] sm:$0xff]  ;;  %v2822_v22 = vld [vmem:[#allocation12 + $0x50] sm:$0xff] }
 0x345   :  { %3367 = vmatmul.mubr.msk.f32.vlgmr.msra.gmra.mrb[20].mxu0 %vm138_vm1, %v2244_v7  ;;  %3547 = vmatprep.subr.bf16.mxu1 %v4641_v53  ;;  %v3569_v60 = vpack.c.bf16 %v2813_v0, %v2812_v32  ;;  %v2824_v24 = vld [vmem:[#allocation12 + $0x60] sm:$0xff]  ;;  %v2826_v36 = vld [vmem:[#allocation12 + $0x70] sm:$0xff] }
 0x346   :  { %3537 = vmatpush3.bf16.msra.mxu0 %v3536_v62  ;;  %3373 = vmatprep.mubr.msk.f32.mxu0 %vm3771_vm0, %v4640_v52  ;;  %v2662_v62 = vshrl.u32 %v2661_v3, 7 }
 0x347   :  { %3538 = vmatprep.subr.bf16.mxu0 %v4641_v53 }
 0x348   :  { %3549 = vmatpush3.bf16.msra.mxu1 %v3548_v44  ;;  %v4552_v7 = vsub.s32 0, %v2662_v62  ;;  %v2815_v44 = vld [vmem:[#allocation12 + $0x18] sm:$0xff] }
 0x349   :  { %3550 = vmatprep.subr.bf16.mxu1 %v4641_v53  ;;  %v3572_v46 = vpack.c.bf16 %v2815_v44, %v2814_v43 }
 0x34c   :  { %3552 = vmatpush3.bf16.msra.mxu1 %v3551_v1  ;;  %v2817_v1 = vld [vmem:[#allocation12 + $0x28] sm:$0xff] }
 0x34d   :  { %3374 = vmatmul.mubr.msk.f32.vlgmr.msra.gmra.mrb[20].mxu0 %vm138_vm1, %v2207_v6  ;;  %3553 = vmatprep.subr.bf16.mxu1 %v4641_v53  ;;  %v2656_v6 = vld [vmem:[%s4660_s15] sm:$0x1] }
 0x34e   :  { %3540 = vmatpush3.bf16.msra.mxu0 %v3539_v30  ;;  %3380 = vmatprep.mubr.msk.f32.mxu0 %vm3771_vm0, %v4640_v52 }
 0x34f   :  { %3541 = vmatprep.subr.bf16.mxu0 %v4641_v53 }
 0x355   :  { %3381 = vmatmul.mubr.msk.f32.vlgmr.msra.gmra.mrb[20].mxu0 %vm138_vm1, %v2281_v12 }
 0x356   :  { %3543 = vmatpush3.bf16.msra.mxu0 %v3542_v41  ;;  %3387 = vmatprep.mubr.msk.f32.mxu0 %vm3771_vm0, %v4640_v52 }
 0x357   :  { %3568 = vmatprep.subr.bf16.mxu0 %v4641_v53 }
 0x35d   :  { %3388 = vmatmul.mubr.msk.f32.vlgmr.msra.gmra.mrb[20].mxu0 %vm138_vm1, %v2318_v47 }
 0x35e   :  { %3457 = vmatprep.mubr.msk.f32.mxu0 %vm3771_vm0, %v4640_v52  ;;  %v2684_v52 = vld [vmem:[#allocation11 + $0x38] sm:$0xff]  ;;  %3570 = vmatpush3.bf16.msra.mxu0 %v3569_v60 }
 0x35f   :  { %v3554_v49 = vpack.c.bf16 %v2684_v52, %v2683_v25  ;;  %3571 = vmatprep.subr.bf16.mxu0 %v4641_v53  ;;  %v3575_v25 = vpack.c.bf16 %v2817_v1, %v2816_v48  ;;  %v2818_v52 = vld [vmem:[#allocation12 + $0x30] sm:$0xff] }
 0x361   :  { %3555 = vmatpush3.bf16.msra.mxu1 %v3554_v49  ;;  %v2819_v49 = vld [vmem:[#allocation12 + $0x38] sm:$0xff] }
 0x362   :  { %3556 = vmatprep.subr.bf16.mxu1 %v4641_v53  ;;  %3573 = vmatpush3.bf16.msra.mxu0 %v3572_v46  ;;  %v3578_v63 = vpack.c.bf16 %v2819_v49, %v2818_v52 }
 0x363   :  { %3574 = vmatprep.subr.bf16.mxu0 %v4641_v53 }
 0x365   :  { %3558 = vmatpush3.bf16.msra.mxu1 %v3557_v42  ;;  %v2821_v42 = vld [vmem:[#allocation12 + $0x48] sm:$0xff] }
 0x366   :  { %3559 = vmatprep.subr.bf16.mxu1 %v4641_v53  ;;  %3576 = vmatpush3.bf16.msra.mxu0 %v3575_v25  ;;  %v3581_v27 = vpack.c.bf16 %v2821_v42, %v2820_v14 }
 0x367   :  { %3577 = vmatprep.subr.bf16.mxu0 %v4641_v53 }
 0x369   :  { %3561 = vmatpush3.bf16.msra.mxu1 %v3560_v21  ;;  %v2823_v21 = vld [vmem:[#allocation12 + $0x58] sm:$0xff] }
 0x36a   :  { %3562 = vmatprep.subr.bf16.mxu1 %v4641_v53  ;;  %3579 = vmatpush3.bf16.msra.mxu0 %v3578_v63  ;;  %v3584_v23 = vpack.c.bf16 %v2823_v21, %v2822_v22 }
 0x36b   :  { %3580 = vmatprep.subr.bf16.mxu0 %v4641_v53 }
 0x36d   :  { %3564 = vmatpush3.bf16.msra.mxu1 %v3563_v33  ;;  %v2825_v33 = vld [vmem:[#allocation12 + $0x68] sm:$0xff] }
 0x36e   :  { %3565 = vmatprep.subr.bf16.mxu1 %v4641_v53  ;;  %3582 = vmatpush3.bf16.msra.mxu0 %v3581_v27  ;;  %v3587_v50 = vpack.c.bf16 %v2825_v33, %v2824_v24 }
 0x36f   :  { %3583 = vmatprep.subr.bf16.mxu0 %v4641_v53 }
 0x371   :  { %3567 = vmatpush3.bf16.msra.mxu1 %v3566_v37  ;;  %v2827_v37 = vld [vmem:[#allocation12 + $0x78] sm:$0xff] }
 0x372   :  { %3585 = vmatpush3.bf16.msra.mxu0 %v3584_v23 }
 0x373   :  { %3586 = vmatprep.subr.bf16.mxu0 %v4641_v53 }
 0x376   :  { %3588 = vmatpush3.bf16.msra.mxu0 %v3587_v50 }
 0x377   :  { %3589 = vmatprep.subr.bf16.mxu0 %v4641_v53 }
 0x430   :  { %v2619_v55 = vpop.f32.mrb[20].mxu0 }
 0x431   :  { %v2624_v4 = vmul.f32 0.33333334, %v2619_v55  ;;  %v3389_v29 = vpop.f32.mrb[21].mxu0  ;;  %v3590_v55 = vpack.c.bf16 %v2827_v37, %v2826_v36 }
 0x433   :  { %v2632_v59 = vadd.f32 %v3073_v2, %v2624_v4  ;;  %3591 = vmatpush3.bf16.msra.mxu0 %v3590_v55  ;;  %v3074_v2 = vld [vmem:[%s4662_s18] ss:$0 sm:$0xff] }
 0x435   :  { %v2633_v34 = vmax.f32 %v2632_v59, 0.0 }
 0x437   :  { %v2635_v38 = vsel %vm2634_vm2, %v2633_v34, 0.0  ;;  %v2644_v35 = vmul.f32 %v2633_v34, %v2633_v34 }
 0x438   :  { %v2636_v39 = vrot.slane %v2635_v38, 4 }
 0x439   :  { %v2645_v54 = vsel %vm2634_vm2, %v2644_v35, 0.0 }
 0x43a   :  { %v2637_v45 = vadd.f32 %v2636_v39, %v2635_v38  ;;  %v2646_v58 = vrot.slane %v2645_v54, 4 }
 0x43c   :  { %v2638_v28 = vrot.slane %v2637_v45, 2  ;;  %v2647_v11 = vadd.f32 %v2646_v58, %v2645_v54 }
 0x43e   :  { %v2639_v61 = vadd.f32 %v2638_v28, %v2637_v45  ;;  %v2648_v51 = vrot.slane %v2647_v11, 2 }
 0x440   :  { %v2640_v19 = vrot.slane %v2639_v61, 1  ;;  %v2649_v20 = vadd.f32 %v2648_v51, %v2647_v11 }
 0x442   :  { %v2641_v9 = vadd.f32 %v2640_v19, %v2639_v61  ;;  %v2650_v26 = vrot.slane %v2649_v20, 1 }
 0x444   :  { %v2643_v10 = vmul.f32 0.5, %v2641_v9  ;;  %v2651_v57 = vadd.f32 %v2650_v26, %v2649_v20 }
 0x446   :  { %v2652_v5 = vmul.f32 0.5, %v2651_v57  ;;  %v2653_v18 = vmul.f32 %v2643_v10, %v2643_v10 }
 0x448   :  { %v2654_v56 = vsub.f32 %v2652_v5, %v2653_v18 }
 0x44a   :  { %v2655_v13 = vmax.f32 %v2654_v56, 0.0 }
 0x44c   :  { %v2657_v17 = vadd.f32 1e-05, %v2655_v13 }
 0x44e   :  { %3610 = vrsqrt.f32 %v2657_v17  ;;  %v2791_v17 = vld [vmem:[%s4663_s21] sm:$0x1] }
 0x458   :  { %v3611_v12 = vpop.eup %3610 }
 0x459   :  { %v2659_v47 = vmul.f32 %v3611_v12, %v2656_v6  ;;  %v2802_v6 = vld [vmem:[%s4664_s23] sm:$0x1] }
 0x45b   :  { %v2664_v16 = vrot.slane %v2659_v47, %v4552_v7  ;;  %v2668_v30 = vmul.f32 %v2659_v47, %v2643_v10 }
 0x45d   :  { %v2669_v31 = vsub.f32 %v2667_v15, %v2668_v30  ;;  %v2666_v40 = vmul.f32 %v2664_v16, %v2633_v34 }
 0x45f   :  { %v2674_v41 = vrot.slane %v2669_v31, %v4552_v7 }
 0x461   :  { %v2676_v8 = vadd.f32 %v2674_v41, %v2666_v40  ;;  %v3075_v40 = vld [vmem:[%s4665_s30] ss:$0 sm:$0xff] }
 0x463   :  { %3423 = vmatmul.mubr.f32.vlgmr.msra.gmra.mrb[28].mxu1 %v2676_v8 }
 0x536   :  { %v2766_v4 = vpop.f32.mrb[28].mxu1 }
 0x537   :  { %v2767_v29 = vadd.f32 %v3074_v2, %v2766_v4  ;;  %v3424_v59 = vpop.f32.mrb[29].mxu1 }
 0x539   :  { %v2770_v34 = vmax.f32 %v2767_v29, 0.0 }
 0x53b   :  { %v2771_v38 = vsel %vm2634_vm2, %v2770_v34, 0.0  ;;  %v2779_v35 = vmul.f32 %v2770_v34, %v2770_v34 }
 0x53c   :  { %v2772_v39 = vrot.slane %v2771_v38, 4 }
 0x53d   :  { %v2780_v54 = vsel %vm2634_vm2, %v2779_v35, 0.0 }
 0x53e   :  { %v2773_v45 = vadd.f32 %v2772_v39, %v2771_v38  ;;  %v2781_v58 = vrot.slane %v2780_v54, 4 }
 0x540   :  { %v2774_v28 = vrot.slane %v2773_v45, 2  ;;  %v2782_v11 = vadd.f32 %v2781_v58, %v2780_v54 }
 0x542   :  { %v2775_v53 = vadd.f32 %v2774_v28, %v2773_v45  ;;  %v2783_v61 = vrot.slane %v2782_v11, 2 }
 0x544   :  { %v2776_v51 = vrot.slane %v2775_v53, 1  ;;  %v2784_v19 = vadd.f32 %v2783_v61, %v2782_v11 }
 0x546   :  { %v2777_v20 = vadd.f32 %v2776_v51, %v2775_v53  ;;  %v2785_v9 = vrot.slane %v2784_v19, 1 }
 0x548   :  { %v2778_v26 = vmul.f32 0.5, %v2777_v20  ;;  %v2786_v10 = vadd.f32 %v2785_v9, %v2784_v19 }
 0x54a   :  { %v2787_v57 = vmul.f32 0.5, %v2786_v10  ;;  %v2788_v5 = vmul.f32 %v2778_v26, %v2778_v26 }
 0x54c   :  { %v2789_v18 = vsub.f32 %v2787_v57, %v2788_v5 }
 0x54e   :  { %v2790_v56 = vmax.f32 %v2789_v18, 0.0 }
 0x550   :  { %v2792_v13 = vadd.f32 1e-05, %v2790_v56 }
 0x552   :  { %3612 = vrsqrt.f32 %v2792_v13 }
 0x55c   :  { %v3613_v3 = vpop.eup %3612 }
 0x55d   :  { %v2794_v62 = vmul.f32 %v3613_v3, %v2791_v17 }
 0x55f   :  { %v2799_v12 = vrot.slane %v2794_v62, %v4552_v7  ;;  %v2803_v47 = vmul.f32 %v2794_v62, %v2778_v26 }
 0x561   :  { %v2804_v15 = vsub.f32 %v2802_v6, %v2803_v47  ;;  %v2801_v16 = vmul.f32 %v2799_v12, %v2770_v34 }
 0x563   :  { %v2809_v30 = vrot.slane %v2804_v15, %v4552_v7 }
 0x565   :  { %v2811_v31 = vadd.f32 %v2809_v30, %v2801_v16 }
 0x567   :  { %3458 = vmatmul.mubr.f32.vlgmr.msra.gmra.mrb[22].mxu0 %v2811_v31 }
 0x63a   :  { %v2901_v41 = vpop.f32.mrb[22].mxu0 }
 0x63b   :  { %v2902_v8 = vadd.f32 %v3075_v40, %v2901_v41  ;;  %v3459_v32 = vpop.f32.mrb[23].mxu0 }
 0x63d   :  { %v2905_v0 = vsel %vm2634_vm2, %v2902_v8, -inf }
 0x63e   :  { %2906 = vmax.xlane.f32.xlu0 %v2905_v0 }
 0x6cb   :  { %v2907_v60 = vpop.xlane.xlu0 %2906 }
 0x6cc   :  { %v2908_v43 = vsub.f32 %v2902_v8, %v2907_v60 }
 0x6ce   :  { %v2909_v44 = vmul.f32 1.442695, %v2908_v43 }
 0x6d0   :  { %3614 = vpow2.f32 %v2909_v44 }
 0x6da   :  { %v3615_v46 = vpop.eup %3614 }
 0x6db   :  { %v2911_v48 = vsel %vm2634_vm2, %v3615_v46, 0.0 }
 0x6dc   :  { %2912 = vadd.xlane.f32.xlu0 %v2911_v48 }
 0x769   :  { %v2913_v7 = vpop.xlane.xlu0 %2912 }
 0x76a   :  { %3616 = vrcp.f32 %v2913_v7 }
 0x774   :  { %v3617_v1 = vpop.eup %3616 }
 0x775   :  { %v2915_v25 = vmul.f32 %v3617_v1, %v3615_v46 }
 0x777   :  { %2916 = vst [vmem:[#allocation14] sm:$0x3] %v2915_v25 }
 0x778   :  { %3739 = shalt.err (!%p3736_p2)
}
 0x779   :  { %s4666_s5 = sld [smem:[#allocation31_spill]] }
 0x77f   :  { %s3740_s6 = scalar_lea.hbm %s4666_s5, 32 }
 0x780   :  { %p3741_p3 = scmp.ne.s32.totalorder %s4666_s5, %s3740_s6  ;;  %p3744_p4 = scmp.lt.u32.totalorder %s3740_s6, %s4666_s5 }
 0x782   :  { %p3746_p5 = pnand %p3744_p4, %p3741_p3 }
 0x784   :  { %3749 = shalt.err (!%p3746_p5)
}
 0x785   :  { %2926 = dma.vmem_to_hbm [thread:$0]  %s2924_s29, 32, %s4666_s5, [#allocation4]  }
 0x786   :  { %3760 = dma.done.wait [#allocation4], 32  }
 0x787   :  { %3761 = vsyncadd [#allocation4], 4294967264 }
 0x788   :  { %2930 = vsyncpa [#allocation3], 1 }
 0x789   :  { %2931 = vsyncpa [#allocation10], 1 }
 0x78a   :  { %2932 = vsyncpa [#allocation13], 1 }
 0x78b   :  { %2933 = vsyncpa [#allocation4], 1 }
 0x78c   :  { %2934 = vsyncpa [#allocation5], 1 }
 0x78d   :  { %2935 = vsyncpa [#allocation6], 1 }

</bundles_post_ra>
